<compile_context>
chip_gen: v5e
topology: v5e:2x2
jax: 0.10.0
libtpu: 0.0.40
codegen_flags: <defaults>
</compile_context>

<pallas_src>
import jax
import jax.numpy as jnp
from jax.experimental import pallas as pl
from jax.experimental.pallas import tpu as pltpu


def _vmem_capacity_bytes(default=64 * 1024 * 1024):
    """Best-effort VMEM capacity query; falls back to the smallest modern part."""
    try:
        return int(pltpu.get_tpu_info().vmem_capacity_bytes)
    except Exception:
        return default


# ----------------------------------------------------------------------------
# Kernel: one H-block of the fused LSTM cell (matmuls + gates + state update).
# ----------------------------------------------------------------------------
def _lstm_cell_kernel(x_ref, h_ref, c_ref, wx_ref, wh_ref, b_ref,
                      h_out_ref, c_out_ref):
    cdt = wx_ref.dtype
    x = x_ref[...].astype(cdt)                      # (B, Din)
    h = h_ref[...].astype(cdt)                      # (B, H)  full hidden (contraction)

    # Gate pre-activations for this H-block; f32 MXU accumulation with the
    # fused bias added directly (no zero-init / separate add pass).
    gates = (jnp.dot(x, wx_ref[...], preferred_element_type=jnp.float32)
             + jnp.dot(h, wh_ref[...], preferred_element_type=jnp.float32)
             + b_ref[...])                          # (B, 4*tn) f32

    tn = gates.shape[-1] // 4                       # static
    i_g = jax.nn.sigmoid(gates[:, 0 * tn:1 * tn])
    f_g = jax.nn.sigmoid(gates[:, 1 * tn:2 * tn])
    g_g = jnp.tanh(gates[:, 2 * tn:3 * tn])
    o_g = jax.nn.sigmoid(gates[:, 3 * tn:4 * tn])

    c_old = c_ref[...].astype(jnp.float32)
    c_new = f_g * c_old + i_g * g_g
    h_new = o_g * jnp.tanh(c_new)

    h_out_ref[...] = h_new.astype(h_out_ref.dtype)
    c_out_ref[...] = c_new.astype(c_out_ref.dtype)


# ----------------------------------------------------------------------------
# One-time parameter preparation (param-load time, NOT per forward call).
# ----------------------------------------------------------------------------
def _pick_block_h(H, Din, itemsize, vmem_capacity):
    """H-block size: whole H if the double-buffered weight block fits a
    generation-aware budget, else the largest 128-multiple divisor of H."""
    budget = vmem_capacity // 4              # headroom for pipeline + activations
    per_col = (Din + H) * 4 * itemsize       # weight bytes per H column (4 gates)
    max_tn = budget // max(2 * per_col, 1)   # 2x for double-buffering
    if max_tn >= H or H % 128 != 0:
        return H
    tn = max(min((max_tn // 128) * 128, H), 128)
    while H % tn != 0:                       # need a clean divisor for the grid
        tn -= 128
    return max(tn, 128)


def prepare_params(w_ih, w_hh, b_ih, b_hh, compute_dtype=jnp.bfloat16,
                   block_h=None):
    """Pre-transpose weights, permute columns per H-block and fuse biases once.

    w_ih: (4H, Din), w_hh: (4H, H), b_ih/b_hh: (4H,)  (PyTorch gate order i,f,g,o)
    Returns dict(wx=(Din,4H), wh=(H,4H), b=(nh,1,4*tn) f32, tn=int).
    compute_dtype=jnp.float32 gives full-precision gate pre-activations.
    """
    # TODO(synk): optional int8 weight path (per-output-column scales) for
    # v5e/v6e to halve weight DMA bytes; needs accuracy validation.
    w_ih = jnp.asarray(w_ih, jnp.float32)
    w_hh = jnp.asarray(w_hh, jnp.float32)
    fourH, Din = w_ih.shape
    H = fourH // 4
    assert w_hh.shape == (4 * H, H)

    if block_h is None:
        block_h = _pick_block_h(H, Din, jnp.dtype(compute_dtype).itemsize,
                                _vmem_capacity_bytes())
    tn = int(block_h)
    assert H % tn == 0
    nh = H // tn

    def permute_cols(w_t):
        # (rows, 4H) with col = g*H + j*tn + t  ->  col = j*4*tn + g*tn + t
        rows = w_t.shape[0]
        w_t = w_t.reshape(rows, 4, nh, tn).transpose(0, 2, 1, 3)
        return w_t.reshape(rows, nh * 4 * tn)

    wx = permute_cols(w_ih.T).astype(compute_dtype)        # (Din, 4H)
    wh = permute_cols(w_hh.T).astype(compute_dtype)        # (H,   4H)

    b = jnp.asarray(b_ih, jnp.float32) + jnp.asarray(b_hh, jnp.float32)
    b = b.reshape(4, nh, tn).transpose(1, 0, 2).reshape(nh, 1, 4 * tn)
    return dict(wx=wx, wh=wh, b=b, tn=tn)


# ----------------------------------------------------------------------------
# Forward wrapper (LSTMhead.forward equivalent).
# ----------------------------------------------------------------------------
def lstm_head_forward(x, hidden_state, prepared, *, donate_state=False):
    """x: (B, Din); hidden_state = (h0, c0), each (1, B, H).
    Returns (out (B, H), (h_new (1, B, H), c_new (1, B, H))) -- state in f32."""
    wx, wh, b, tn = prepared["wx"], prepared["wh"], prepared["b"], prepared["tn"]
    h0, c0 = hidden_state
    B, Din = x.shape
    H = h0.shape[-1]
    nh = H // tn
    assert wx.shape == (Din, 4 * H) and wh.shape == (H, 4 * H)
    assert h0.shape == (1, B, H) and c0.shape == (1, B, H)

    cap = _vmem_capacity_bytes()
    vmem_limit = int(min(cap * 3 // 4, 96 * 1024 * 1024))   # 48 MiB v7x, 96 MiB v5e/v6e

    # Optional state-buffer donation (caller must not reuse h0/c0 afterwards,
    # and must keep state in f32).  h0 is re-read by every H block, so it is
    # only safe to alias when there is a single block.
    io_aliases = {}
    if donate_state:
        io_aliases[2] = 1                 # c0 -> c_new (block-local read/write)
        if nh == 1:
            io_aliases[1] = 0             # h0 -> h_new

    h_new, c_new = pl.pallas_call(
        _lstm_cell_kernel,
        out_shape=(jax.ShapeDtypeStruct((1, B, H), jnp.float32),
                   jax.ShapeDtypeStruct((1, B, H), jnp.float32)),
        grid=(nh,),
        in_specs=[
            pl.BlockSpec((B, Din), lambda j: (0, 0)),              # x (full)
            pl.BlockSpec((None, B, H), lambda j: (0, 0, 0)),       # h0 (full)
            pl.BlockSpec((None, B, tn), lambda j: (0, 0, j)),      # c0 H-block
            pl.BlockSpec((Din, 4 * tn), lambda j: (0, j)),         # W_ih^T block
            pl.BlockSpec((H, 4 * tn), lambda j: (0, j)),           # W_hh^T block
            pl.BlockSpec((None, 1, 4 * tn), lambda j: (j, 0, 0)),  # fused bias
        ],
        out_specs=(pl.BlockSpec((None, B, tn), lambda j: (0, 0, j)),
                   pl.BlockSpec((None, B, tn), lambda j: (0, 0, j))),
        compiler_params=pltpu.CompilerParams(
            dimension_semantics=("parallel",),        # H blocks are independent
            vmem_limit_bytes=vmem_limit),
        input_output_aliases=io_aliases,
    )(x, h0, c0, wx, wh, b)

    # PyTorch LSTMhead returns (x[0], hidden_state) with x[0] == h_new.
    return h_new[0], (h_new, c_new)


# ----------------------------------------------------------------------------
# Reference + parameter init mirroring LSTMhead.reset_parameters.
# ----------------------------------------------------------------------------
def _lstm_ref(x, h, c, w_ih, w_hh, b_ih, b_hh):
    gates = x @ w_ih.T + b_ih + h @ w_hh.T + b_hh
    H = h.shape[-1]
    i = jax.nn.sigmoid(gates[:, 0 * H:1 * H])
    f = jax.nn.sigmoid(gates[:, 1 * H:2 * H])
    g = jnp.tanh(gates[:, 2 * H:3 * H])
    o = jax.nn.sigmoid(gates[:, 3 * H:4 * H])
    c_new = f * c + i * g
    h_new = o * jnp.tanh(c_new)
    return h_new, c_new


def make_params(key, in_dim, hidden):
    """Mirror LSTMhead.__init__/reset_parameters: weight_ih_l0/weight_hh_l0
    zeroed; biases keep PyTorch's default U(-1/sqrt(H), 1/sqrt(H))."""
    k1, k2 = jax.random.split(key)
    bound = 1.0 / (hidden ** 0.5)
    w_ih = jnp.zeros((4 * hidden, in_dim), jnp.float32)
    w_hh = jnp.zeros((4 * hidden, hidden), jnp.float32)
    b_ih = jax.random.uniform(k1, (4 * hidden,), jnp.float32, -bound, bound)
    b_hh = jax.random.uniform(k2, (4 * hidden,), jnp.float32, -bound, bound)
    return w_ih, w_hh, b_ih, b_hh


if __name__ == "__main__":
    key = jax.random.PRNGKey(0)
    kx, kp, kw1, kw2, kh, kc = jax.random.split(key, 6)

    B, IN_DIM, HIDDEN = 8, 128, 256      # LSTMhead's feature dim is 256

    x = jax.random.normal(kx, (B, IN_DIM), jnp.float32)
    h0 = jnp.zeros((1, B, HIDDEN), jnp.float32)    # init_hidden(): zero state
    c0 = jnp.zeros((1, B, HIDDEN), jnp.float32)

    # --- module-faithful params (weights zeroed per reset_parameters) ---
    w_ih, w_hh, b_ih, b_hh = make_params(kp, IN_DIM, HIDDEN)
    prepared = prepare_params(w_ih, w_hh, b_ih, b_hh)     # one-time prep
    out, (h_new, c_new) = lstm_head_forward(x, (h0, c0), prepared)
    jax.block_until_ready((out, h_new, c_new))

    assert out.shape == (B, HIDDEN)
    assert h_new.shape == (1, B, HIDDEN) and c_new.shape == (1, B, HIDDEN)
    ref_h, ref_c = _lstm_ref(x, h0[0], c0[0], w_ih, w_hh, b_ih, b_hh)
    assert jnp.allclose(out, ref_h, atol=2e-2, rtol=2e-2)
    assert jnp.allclose(c_new[0], ref_c, atol=2e-2, rtol=2e-2)

    # --- non-zero weights / state: exercises both matmuls + gate math ---
    w_ih2 = 0.05 * jax.random.normal(kw1, (4 * HIDDEN, IN_DIM), jnp.float32)
    w_hh2 = 0.05 * jax.random.normal(kw2, (4 * HIDDEN, HIDDEN), jnp.float32)
    h1 = 0.5 * jax.random.normal(kh, (1, B, HIDDEN), jnp.float32)
    c1 = 0.5 * jax.random.normal(kc, (1, B, HIDDEN), jnp.float32)
    prepared2 = prepare_params(w_ih2, w_hh2, b_ih, b_hh)
    out2, (h2, c2) = lstm_head_forward(x, (h1, c1), prepared2)
    jax.block_until_ready((out2, h2, c2))
    ref_h2, ref_c2 = _lstm_ref(x, h1[0], c1[0], w_ih2, w_hh2, b_ih, b_hh)
    assert jnp.allclose(out2, ref_h2, atol=2e-2, rtol=2e-2)
    assert jnp.allclose(c2[0], ref_c2, atol=2e-2, rtol=2e-2)

    # --- multi-block H path (tn < H): checks the parallel H tiling and the
    #     per-block gate/column permutation, independent of VMEM size ---
    prepared3 = prepare_params(w_ih2, w_hh2, b_ih, b_hh, block_h=128)
    out3, (h3, c3) = lstm_head_forward(x, (h1, c1), prepared3)
    jax.block_until_ready((out3, h3, c3))
    assert jnp.allclose(out3, ref_h2, atol=2e-2, rtol=2e-2)
    assert jnp.allclose(c3[0], ref_c2, atol=2e-2, rtol=2e-2)

    print("KERNEL_OK")
</pallas_src>

<mosaic_0001>
module attributes {stable_mosaic.version = 11 : i64} {
  func.func @_lstm_cell_kernel(%arg0: i32, %arg1: memref<8x128xf32, #tpu.memory_space<vmem>>, %arg2: memref<1x8x256xf32, #tpu.memory_space<vmem>>, %arg3: memref<1x8x256xf32, #tpu.memory_space<vmem>>, %arg4: memref<128x1024xbf16, #tpu.memory_space<vmem>>, %arg5: memref<256x1024xbf16, #tpu.memory_space<vmem>>, %arg6: memref<1x1x1024xf32, #tpu.memory_space<vmem>>, %arg7: memref<1x8x256xf32, #tpu.memory_space<vmem>>, %arg8: memref<1x8x256xf32, #tpu.memory_space<vmem>>) attributes {dimension_semantics = [#tpu.dimension_semantics<parallel>], iteration_bounds = array<i64: 1>, scalar_prefetch = 0 : i64, scratch_operands = 0 : i64, tpu.core_type = #tpu.core_type<tc>, window_params = [{pipeline_mode = #tpu.pipeline_mode<synchronous>, transform_indices = @transform_0, window_bounds = array<i64: 8, 128>}, {pipeline_mode = #tpu.pipeline_mode<synchronous>, transform_indices = @transform_1, window_bounds = array<i64: 1, 8, 256>}, {transform_indices = @transform_2, window_bounds = array<i64: 1, 8, 256>}, {transform_indices = @transform_3, window_bounds = array<i64: 128, 1024>}, {transform_indices = @transform_4, window_bounds = array<i64: 256, 1024>}, {transform_indices = @transform_5, window_bounds = array<i64: 1, 1, 1024>}, {transform_indices = @transform_6, window_bounds = array<i64: 1, 8, 256>}, {transform_indices = @transform_7, window_bounds = array<i64: 1, 8, 256>}]} {
    %c0 = arith.constant 0 : index
    %c0_0 = arith.constant 0 : index
    %0 = vector.load %arg1[%c0, %c0_0] : memref<8x128xf32, #tpu.memory_space<vmem>>, vector<8x128xf32>
    %1 = arith.truncf %0 : vector<8x128xf32> to vector<8x128xbf16>
    %c0_1 = arith.constant 0 : index
    %c0_2 = arith.constant 0 : index
    %c0_3 = arith.constant 0 : index
    %2 = vector.load %arg2[%c0_1, %c0_2, %c0_3] : memref<1x8x256xf32, #tpu.memory_space<vmem>>, vector<1x8x256xf32>
    %3 = vector.shape_cast %2 : vector<1x8x256xf32> to vector<8x256xf32>
    %4 = arith.truncf %3 : vector<8x256xf32> to vector<8x256xbf16>
    %c0_4 = arith.constant 0 : index
    %c0_5 = arith.constant 0 : index
    %5 = vector.load %arg4[%c0_4, %c0_5] : memref<128x1024xbf16, #tpu.memory_space<vmem>>, vector<128x1024xbf16>
    %cst = arith.constant dense<0.000000e+00> : vector<8x1024xf32>
    %6 = tpu.matmul %1, %5, %cst {dimension_numbers = #tpu.dot_dimension_numbers<[1], [0], [0], [1], [0, 0, 1, 1], [], []>} : vector<8x128xbf16>, vector<128x1024xbf16>, vector<8x1024xf32> -> vector<8x1024xf32>
    %c0_6 = arith.constant 0 : index
    %c0_7 = arith.constant 0 : index
    %7 = vector.load %arg5[%c0_6, %c0_7] : memref<256x1024xbf16, #tpu.memory_space<vmem>>, vector<256x1024xbf16>
    %cst_8 = arith.constant dense<0.000000e+00> : vector<8x1024xf32>
    %8 = tpu.matmul %4, %7, %cst_8 {dimension_numbers = #tpu.dot_dimension_numbers<[1], [0], [0], [1], [0, 0, 1, 1], [], []>} : vector<8x256xbf16>, vector<256x1024xbf16>, vector<8x1024xf32> -> vector<8x1024xf32>
    %9 = arith.addf %6, %8 : vector<8x1024xf32>
    %c0_9 = arith.constant 0 : index
    %c0_10 = arith.constant 0 : index
    %c0_11 = arith.constant 0 : index
    %10 = vector.load %arg6[%c0_9, %c0_10, %c0_11] : memref<1x1x1024xf32, #tpu.memory_space<vmem>>, vector<1x1x1024xf32>
    %11 = vector.shape_cast %10 : vector<1x1x1024xf32> to vector<1x1024xf32>
    %12 = vector.broadcast %11 : vector<1x1024xf32> to vector<8x1024xf32>
    %13 = arith.addf %9, %12 : vector<8x1024xf32>
    %14 = vector.extract_strided_slice %13 {offsets = [0, 0], sizes = [8, 256], strides = [1, 1]} : vector<8x1024xf32> to vector<8x256xf32>
    %15 = arith.negf %14 : vector<8x256xf32>
    %16 = math.exp %15 : vector<8x256xf32>
    %cst_12 = arith.constant 1.000000e+00 : f32
    %17 = vector.broadcast %cst_12 : f32 to vector<8x256xf32>
    %18 = arith.addf %17, %16 : vector<8x256xf32>
    %19 = arith.divf %17, %18 : vector<8x256xf32>
    %20 = vector.extract_strided_slice %13 {offsets = [0, 256], sizes = [8, 256], strides = [1, 1]} : vector<8x1024xf32> to vector<8x256xf32>
    %21 = arith.negf %20 : vector<8x256xf32>
    %22 = math.exp %21 : vector<8x256xf32>
    %cst_13 = arith.constant 1.000000e+00 : f32
    %23 = vector.broadcast %cst_13 : f32 to vector<8x256xf32>
    %24 = arith.addf %23, %22 : vector<8x256xf32>
    %25 = arith.divf %23, %24 : vector<8x256xf32>
    %26 = vector.extract_strided_slice %13 {offsets = [0, 512], sizes = [8, 256], strides = [1, 1]} : vector<8x1024xf32> to vector<8x256xf32>
    %27 = math.tanh %26 : vector<8x256xf32>
    %28 = vector.extract_strided_slice %13 {offsets = [0, 768], sizes = [8, 256], strides = [1, 1]} : vector<8x1024xf32> to vector<8x256xf32>
    %29 = arith.negf %28 : vector<8x256xf32>
    %30 = math.exp %29 : vector<8x256xf32>
    %cst_14 = arith.constant 1.000000e+00 : f32
    %31 = vector.broadcast %cst_14 : f32 to vector<8x256xf32>
    %32 = arith.addf %31, %30 : vector<8x256xf32>
    %33 = arith.divf %31, %32 : vector<8x256xf32>
    %c0_15 = arith.constant 0 : index
    %c0_16 = arith.constant 0 : index
    %c0_17 = arith.constant 0 : index
    %34 = vector.load %arg3[%c0_15, %c0_16, %c0_17] : memref<1x8x256xf32, #tpu.memory_space<vmem>>, vector<1x8x256xf32>
    %35 = vector.shape_cast %34 : vector<1x8x256xf32> to vector<8x256xf32>
    %36 = arith.mulf %25, %35 : vector<8x256xf32>
    %37 = arith.mulf %19, %27 : vector<8x256xf32>
    %38 = arith.addf %36, %37 : vector<8x256xf32>
    %39 = math.tanh %38 : vector<8x256xf32>
    %40 = arith.mulf %33, %39 : vector<8x256xf32>
    %c0_18 = arith.constant 0 : index
    %c0_19 = arith.constant 0 : index
    %c0_20 = arith.constant 0 : index
    %41 = vector.load %arg7[%c0_18, %c0_19, %c0_20] : memref<1x8x256xf32, #tpu.memory_space<vmem>>, vector<1x8x256xf32>
    %42 = vector.shape_cast %41 : vector<1x8x256xf32> to vector<8x256xf32>
    %43 = vector.shape_cast %40 : vector<8x256xf32> to vector<1x8x256xf32>
    tpu.vector_store %arg7[%c0_18, %c0_19, %c0_20], %43 {strides = array<i32>} : memref<1x8x256xf32, #tpu.memory_space<vmem>>, vector<1x8x256xf32>,
    %c0_21 = arith.constant 0 : index
    %c0_22 = arith.constant 0 : index
    %c0_23 = arith.constant 0 : index
    %44 = vector.load %arg8[%c0_21, %c0_22, %c0_23] : memref<1x8x256xf32, #tpu.memory_space<vmem>>, vector<1x8x256xf32>
    %45 = vector.shape_cast %44 : vector<1x8x256xf32> to vector<8x256xf32>
    %46 = vector.shape_cast %38 : vector<8x256xf32> to vector<1x8x256xf32>
    tpu.vector_store %arg8[%c0_21, %c0_22, %c0_23], %46 {strides = array<i32>} : memref<1x8x256xf32, #tpu.memory_space<vmem>>, vector<1x8x256xf32>,
    return
  }
  func.func @transform_0(%arg0: i32) -> (i32, i32) {
    %c0_i32 = arith.constant 0 : i32
    %c0_i32_0 = arith.constant 0 : i32
    %c0_i32_1 = arith.constant 0 : i32
    return %c0_i32, %c0_i32_0 : i32, i32
  }
  func.func @transform_1(%arg0: i32) -> (i32, i32, i32) {
    %c0_i32 = arith.constant 0 : i32
    %c0_i32_0 = arith.constant 0 : i32
    %c0_i32_1 = arith.constant 0 : i32
    %c0_i32_2 = arith.constant 0 : i32
    return %c0_i32, %c0_i32_0, %c0_i32_1 : i32, i32, i32
  }
  func.func @transform_2(%arg0: i32) -> (i32, i32, i32) {
    %c0_i32 = arith.constant 0 : i32
    %c0_i32_0 = arith.constant 0 : i32
    %c0_i32_1 = arith.constant 0 : i32
    return %c0_i32, %c0_i32_0, %arg0 : i32, i32, i32
  }
  func.func @transform_3(%arg0: i32) -> (i32, i32) {
    %c0_i32 = arith.constant 0 : i32
    %c0_i32_0 = arith.constant 0 : i32
    return %c0_i32, %arg0 : i32, i32
  }
  func.func @transform_4(%arg0: i32) -> (i32, i32) {
    %c0_i32 = arith.constant 0 : i32
    %c0_i32_0 = arith.constant 0 : i32
    return %c0_i32, %arg0 : i32, i32
  }
  func.func @transform_5(%arg0: i32) -> (i32, i32, i32) {
    %c0_i32 = arith.constant 0 : i32
    %c0_i32_0 = arith.constant 0 : i32
    %c0_i32_1 = arith.constant 0 : i32
    return %arg0, %c0_i32, %c0_i32_0 : i32, i32, i32
  }
  func.func @transform_6(%arg0: i32) -> (i32, i32, i32) {
    %c0_i32 = arith.constant 0 : i32
    %c0_i32_0 = arith.constant 0 : i32
    %c0_i32_1 = arith.constant 0 : i32
    return %c0_i32, %c0_i32_0, %arg0 : i32, i32, i32
  }
  func.func @transform_7(%arg0: i32) -> (i32, i32, i32) {
    %c0_i32 = arith.constant 0 : i32
    %c0_i32_0 = arith.constant 0 : i32
    %c0_i32_1 = arith.constant 0 : i32
    return %c0_i32, %c0_i32_0, %arg0 : i32, i32, i32
  }
}

</mosaic_0001>

<bundles_post_ra>
// kernel: tpu_custom_call.1
= control target key start
LH: loop header
LB: loop body
LE: loop exit
PB: predicated region body
PF: predicated region fallthrough
CT: control target
= control target key end

     0   :  { %13 = vsyncpa [#allocation3], 0  ;;  %s3180_s0 = inlined_call_operand.hbm [shape: f32[8,128], index: 0, kind: input, shape index: {}]   ;;  %s3181_s1 = inlined_call_operand.hbm [shape: f32[1,8,256], index: 1, kind: input, shape index: {}]   ;;  %s3182_s2 = inlined_call_operand.hbm [shape: f32[1,8,256], index: 2, kind: input, shape index: {}]   ;;  %s3183_s3 = inlined_call_operand.hbm [shape: bf16[128,1024], index: 3, kind: input, shape index: {}]   ;;  %s3184_s4 = inlined_call_operand.hbm [shape: bf16[256,1024], index: 4, kind: input, shape index: {}]   ;;  %s3185_s5 = inlined_call_operand.hbm [shape: f32[1,1,1024], index: 5, kind: input, shape index: {}]   ;;  %s3186_s6 = inlined_call_operand.hbm [shape: f32[1,8,256], index: 6, kind: output, shape index: {0}]   ;;  %s3187_s7 = inlined_call_operand.hbm [shape: f32[1,8,256], index: 7, kind: output, shape index: {1}]  }
   0x1   :  { %14 = vsyncpa [#allocation6], 0 }
   0x2   :  { %15 = vsyncpa [#allocation9], 0 }
   0x3   :  { %16 = vsyncpa [#allocation12], 0 }
   0x4   :  { %17 = vsyncpa [#allocation4], 0  ;;  %s35_s26 = sshll.u32 %s3181_s1, 4  ;;  %s36_s26 = int_to_ptr.hbm [resolvable:$true] %s35_s26 }
   0x5   :  { %18 = vsyncpa [#allocation15], 0  ;;  %s2989_s27 = smov [#allocation5]   ;;  %s56_s8 = sshll.u32 %s3183_s3, 4  ;;  %s57_s8 = int_to_ptr.hbm [resolvable:$true] %s56_s8 }
   0x6   :  { %s37_s28 = sshll.u32 %s2989_s27, 4  ;;  %s2990_s9 = smov [#allocation8]   ;;  %s38_s28 = int_to_ptr.vmem [resolvable:$true] %s37_s28 }
   0x7   :  { %40 = dma.hbm_to_vmem [thread:$0]  %s36_s26, 256, %s38_s28, [#allocation6]  }
   0x8   :  { %s58_s10 = sshll.u32 %s2990_s9, 4  ;;  %s2991_s11 = smov 512   ;;  %s59_s10 = int_to_ptr.vmem [resolvable:$true] %s58_s10 }
   0x9   :  { %s2992_s12 = smov 32   ;;  %s24_s1 = sshll.u32 %s3180_s0, 4  ;;  %s25_s1 = int_to_ptr.hbm [resolvable:$true] %s24_s1 }
   0xa   :  { %64 = dma.hbm_to_vmem [thread:$0]  %s57_s8, 8192, %s59_s10, [#allocation9], %s2991_s11, %s2991_s11, %s2992_s12  }
   0xb   :  { %s2993_s15 = smov [#allocation2]   ;;  %s46_s3 = sshll.u32 %s3182_s2, 4  ;;  %s47_s3 = int_to_ptr.hbm [resolvable:$true] %s46_s3 }
   0xc   :  { %s26_s16 = sshll.u32 %s2993_s15, 4  ;;  %s2994_s19 = smov [#allocation7]   ;;  %s27_s16 = int_to_ptr.vmem [resolvable:$true] %s26_s16 }
   0xd   :  { %29 = dma.hbm_to_vmem [thread:$0]  %s25_s1, 128, %s27_s16, [#allocation3]  }
   0xe   :  { %s48_s20 = sshll.u32 %s2994_s19, 4  ;;  %s69_s23 = sshll.u32 %s3184_s4, 4  ;;  %s49_s20 = int_to_ptr.vmem [resolvable:$true] %s48_s20  ;;  %s70_s23 = int_to_ptr.hbm [resolvable:$true] %s69_s23 }
   0xf   :  { %51 = dma.hbm_to_vmem [thread:$0]  %s47_s3, 256, %s49_s20, [#allocation6]  }
  0x10   :  { %s83_s25 = sshll.u32 %s3185_s5, 4  ;;  %s2995_s26 = smov [#allocation10]   ;;  %s84_s25 = int_to_ptr.hbm [resolvable:$true] %s83_s25 }
  0x11   :  { %s71_s27 = sshll.u32 %s2995_s26, 4  ;;  %s2996_s2 = smov [#allocation11]   ;;  %s72_s27 = int_to_ptr.vmem [resolvable:$true] %s71_s27 }
  0x12   :  { %77 = dma.hbm_to_vmem [thread:$0]  %s70_s23, 16384, %s72_s27, [#allocation9], %s2991_s11, %s2991_s11, %s2992_s12  }
  0x13   :  { %s85_s28 = sshll.u32 %s2996_s2, 4  ;;  %s86_s28 = int_to_ptr.vmem [resolvable:$true] %s85_s28 }
  0x14   :  { %88 = dma.hbm_to_vmem [thread:$0]  %s84_s25, 128, %s86_s28, [#allocation12]  }
  0x15   :  { %2977 = dma.done.wait [#allocation3], 128  }
  0x16   :  { %2978 = vsyncadd [#allocation3], 4294967168 }
  0x17   :  { %2979 = dma.done.wait [#allocation6], 512  }
  0x18   :  { %2980 = vsyncadd [#allocation6], 4294966784 }
  0x19   :  { %2981 = dma.done.wait [#allocation9], 24576  }
  0x1a   :  { %2982 = vsyncadd [#allocation9], 4294942720 }
  0x1b   :  { %2983 = dma.done.wait [#allocation12], 128  }
  0x1c   :  { %2984 = vsyncadd [#allocation12], 4294967168  ;;  %v2003_v0 = vld [vmem:[#allocation10 + $0x1c0] sm:$0xf]  ;;  %v2671_v5 = vld [vmem:[#allocation10 + $0x1c4] sm:$0xf] }
  0x1d   :  { %v2675_v1 = vld [vmem:[#allocation10 + $0x1dc] sm:$0xf0]  ;;  %v2005_v6 = vld [vmem:[#allocation10 + $0x1e0] sm:$0xf0]  ;;  %s2997_s4 = smov [#allocation14]   ;;  %s1759_s8 = sshll.u32 %s3187_s7, 4  ;;  %s1760_s8 = int_to_ptr.hbm [resolvable:$true] %s1759_s8 }
  0x1e   :  { %v2259_v2 = vld [vmem:[#allocation10 + $0x3c0] sm:$0xf]  ;;  %v2004_v3 = vor.u32 %v2675_v1, %v2003_v0  ;;  %v2008_v8 = vor.u32 %v2671_v5, %v2005_v6  ;;  %v2735_v9 = vld [vmem:[#allocation10 + $0x3c4] sm:$0xf]  ;;  %s1757_s5 = sshll.u32 %s2997_s4, 4  ;;  %s2998_s7 = smov [#allocation13]   ;;  %s1758_s5 = int_to_ptr.vmem [resolvable:$true] %s1757_s5 }
  0x1f   :  { %v2739_v4 = vld [vmem:[#allocation10 + $0x3dc] sm:$0xf0]  ;;  %v2261_v10 = vld [vmem:[#allocation10 + $0x3e0] sm:$0xf0]  ;;  %s1746_s9 = sshll.u32 %s2998_s7, 4  ;;  %s1748_s12 = sshll.u32 %s3186_s6, 4  ;;  %s1747_s9 = int_to_ptr.vmem [resolvable:$true] %s1746_s9  ;;  %s1749_s12 = int_to_ptr.hbm [resolvable:$true] %s1748_s12 }
  0x20   :  { %v2260_v7 = vor.u32 %v2739_v4, %v2259_v2  ;;  %v1971_v11 = vld [vmem:[#allocation10 + $0x180] sm:$0xf]  ;;  %951 = vmatpush.bf16.msra.mxu0 %v2004_v3  ;;  %v2264_v12 = vor.u32 %v2735_v9, %v2261_v10  ;;  %977 = vmatpush.bf16.msra.mxu2 %v2008_v8  ;;  %v2663_v18 = vld [vmem:[#allocation10 + $0x184] sm:$0xf] }
  0x21   :  { %v2667_v13 = vld [vmem:[#allocation10 + $0x19c] sm:$0xf0]  ;;  %v1973_v19 = vld [vmem:[#allocation10 + $0x1a0] sm:$0xf0] }
  0x22   :  { %v2227_v14 = vld [vmem:[#allocation10 + $0x380] sm:$0xf]  ;;  %964 = vmatpush.bf16.msra.mxu1 %v2260_v7  ;;  %v1972_v16 = vor.u32 %v2667_v13, %v1971_v11  ;;  %v2727_v20 = vld [vmem:[#allocation10 + $0x384] sm:$0xf]  ;;  %990 = vmatpush.bf16.msra.mxu3 %v2264_v12  ;;  %v1976_v21 = vor.u32 %v2663_v18, %v1973_v19 }
  0x23   :  { %v2731_v15 = vld [vmem:[#allocation10 + $0x39c] sm:$0xf0]  ;;  %v2229_v22 = vld [vmem:[#allocation10 + $0x3a0] sm:$0xf0] }
  0x24   :  { %v2228_v17 = vor.u32 %v2731_v15, %v2227_v14  ;;  %v1939_v23 = vld [vmem:[#allocation10 + $0x140] sm:$0xf]  ;;  %v2232_v25 = vor.u32 %v2727_v20, %v2229_v22  ;;  %v2655_v28 = vld [vmem:[#allocation10 + $0x144] sm:$0xf]  ;;  %952 = vmatpush.bf16.msra.mxu0 %v1972_v16  ;;  %978 = vmatpush.bf16.msra.mxu2 %v1976_v21 }
  0x25   :  { %v2659_v24 = vld [vmem:[#allocation10 + $0x15c] sm:$0xf0]  ;;  %v1941_v30 = vld [vmem:[#allocation10 + $0x160] sm:$0xf0] }
  0x26   :  { %v2195_v26 = vld [vmem:[#allocation10 + $0x340] sm:$0xf]  ;;  %v1940_v29 = vor.u32 %v2659_v24, %v1939_v23  ;;  %v2719_v31 = vld [vmem:[#allocation10 + $0x344] sm:$0xf]  ;;  %965 = vmatpush.bf16.msra.mxu1 %v2228_v17  ;;  %v1944_v34 = vor.u32 %v2655_v28, %v1941_v30  ;;  %991 = vmatpush.bf16.msra.mxu3 %v2232_v25  ;;  %v2011_v28 = vld [vmem:[#allocation10 + $0x1c8] sm:$0xf] }
  0x27   :  { %v2723_v27 = vld [vmem:[#allocation10 + $0x35c] sm:$0xf0]  ;;  %v2197_v32 = vld [vmem:[#allocation10 + $0x360] sm:$0xf0]  ;;  %v2267_v30 = vld [vmem:[#allocation10 + $0x3c8] sm:$0xf] }
  0x28   :  { %v2196_v33 = vor.u32 %v2723_v27, %v2195_v26  ;;  %v1907_v35 = vld [vmem:[#allocation10 + $0x100] sm:$0xf]  ;;  %v2200_v38 = vor.u32 %v2719_v31, %v2197_v32  ;;  %v2647_v40 = vld [vmem:[#allocation10 + $0x104] sm:$0xf]  ;;  %953 = vmatpush.bf16.msra.mxu0 %v1940_v29  ;;  %979 = vmatpush.bf16.msra.mxu2 %v1944_v34  ;;  %v2676_v29 = vld [vmem:[#allocation10 + $0x1e4] sm:$0xf0] }
  0x29   :  { %v2651_v36 = vld [vmem:[#allocation10 + $0x11c] sm:$0xf0]  ;;  %v1909_v41 = vld [vmem:[#allocation10 + $0x120] sm:$0xf0]  ;;  %v2740_v32 = vld [vmem:[#allocation10 + $0x3e4] sm:$0xf0] }
  0x2a   :  { %v2163_v37 = vld [vmem:[#allocation10 + $0x300] sm:$0xf]  ;;  %v2711_v42 = vld [vmem:[#allocation10 + $0x304] sm:$0xf]  ;;  %v1908_v44 = vor.u32 %v2651_v36, %v1907_v35  ;;  %966 = vmatpush.bf16.msra.mxu1 %v2196_v33  ;;  %v1912_v46 = vor.u32 %v2647_v40, %v1909_v41  ;;  %992 = vmatpush.bf16.msra.mxu3 %v2200_v38  ;;  %v2672_v33 = vld [vmem:[#allocation10 + $0x1cc] sm:$0xf]  ;;  %v2012_v40 = vor.u32 %v2676_v29, %v2011_v28 }
  0x2b   :  { %v2715_v39 = vld [vmem:[#allocation10 + $0x31c] sm:$0xf0]  ;;  %v2165_v43 = vld [vmem:[#allocation10 + $0x320] sm:$0xf0]  ;;  %v2013_v34 = vld [vmem:[#allocation10 + $0x1e8] sm:$0xf0]  ;;  %v2268_v41 = vor.u32 %v2740_v32, %v2267_v30 }
  0x2c   :  { %v2164_v45 = vor.u32 %v2715_v39, %v2163_v37  ;;  %v1875_v47 = vld [vmem:[#allocation10 + $0xc0] sm:$0xf]  ;;  %v2168_v50 = vor.u32 %v2711_v42, %v2165_v43  ;;  %v2639_v52 = vld [vmem:[#allocation10 + $0xc4] sm:$0xf]  ;;  %954 = vmatpush.bf16.msra.mxu0 %v1908_v44  ;;  %980 = vmatpush.bf16.msra.mxu2 %v1912_v46  ;;  %v2736_v37 = vld [vmem:[#allocation10 + $0x3cc] sm:$0xf]  ;;  %v2016_v42 = vor.u32 %v2672_v33, %v2013_v34 }
  0x2d   :  { %v2643_v48 = vld [vmem:[#allocation10 + $0xdc] sm:$0xf0]  ;;  %v1877_v53 = vld [vmem:[#allocation10 + $0xe0] sm:$0xf0]  ;;  %v2269_v38 = vld [vmem:[#allocation10 + $0x3e8] sm:$0xf0] }
  0x2e   :  { %v2131_v49 = vld [vmem:[#allocation10 + $0x2c0] sm:$0xf]  ;;  %v2703_v54 = vld [vmem:[#allocation10 + $0x2c4] sm:$0xf]  ;;  %v1876_v56 = vor.u32 %v2643_v48, %v1875_v47  ;;  %967 = vmatpush.bf16.msra.mxu1 %v2164_v45  ;;  %v1880_v58 = vor.u32 %v2639_v52, %v1877_v53  ;;  %993 = vmatpush.bf16.msra.mxu3 %v2168_v50  ;;  %v1979_v43 = vld [vmem:[#allocation10 + $0x188] sm:$0xf]  ;;  %v2272_v46 = vor.u32 %v2736_v37, %v2269_v38 }
  0x2f   :  { %v2707_v51 = vld [vmem:[#allocation10 + $0x2dc] sm:$0xf0]  ;;  %v2133_v55 = vld [vmem:[#allocation10 + $0x2e0] sm:$0xf0]  ;;  %v2668_v44 = vld [vmem:[#allocation10 + $0x1a4] sm:$0xf0] }
  0x30   :  { %v2132_v57 = vor.u32 %v2707_v51, %v2131_v49  ;;  %v1843_v59 = vld [vmem:[#allocation10 + $0x80] sm:$0xf]  ;;  %v2136_v62 = vor.u32 %v2703_v54, %v2133_v55  ;;  %v2631_v0 = vld [vmem:[#allocation10 + $0x84] sm:$0xf]  ;;  %955 = vmatpush.bf16.msra.mxu0 %v1876_v56  ;;  %981 = vmatpush.bf16.msra.mxu2 %v1880_v58  ;;  %v2235_v45 = vld [vmem:[#allocation10 + $0x388] sm:$0xf]  ;;  %v1980_v52 = vor.u32 %v2668_v44, %v1979_v43 }
  0x31   :  { %v2635_v60 = vld [vmem:[#allocation10 + $0x9c] sm:$0xf0]  ;;  %v1845_v1 = vld [vmem:[#allocation10 + $0xa0] sm:$0xf0]  ;;  %v2732_v47 = vld [vmem:[#allocation10 + $0x3a4] sm:$0xf0] }
  0x32   :  { %v2099_v61 = vld [vmem:[#allocation10 + $0x280] sm:$0xf]  ;;  %v2695_v2 = vld [vmem:[#allocation10 + $0x284] sm:$0xf]  ;;  %v1844_v4 = vor.u32 %v2635_v60, %v1843_v59  ;;  %968 = vmatpush.bf16.msra.mxu1 %v2132_v57  ;;  %v1848_v6 = vor.u32 %v2631_v0, %v1845_v1  ;;  %994 = vmatpush.bf16.msra.mxu3 %v2136_v62  ;;  %v2664_v48 = vld [vmem:[#allocation10 + $0x18c] sm:$0xf]  ;;  %v2236_v54 = vor.u32 %v2732_v47, %v2235_v45 }
  0x33   :  { %v2699_v63 = vld [vmem:[#allocation10 + $0x29c] sm:$0xf0]  ;;  %v2101_v3 = vld [vmem:[#allocation10 + $0x2a0] sm:$0xf0]  ;;  %v1981_v49 = vld [vmem:[#allocation10 + $0x1a8] sm:$0xf0] }
  0x34   :  { %v2100_v5 = vor.u32 %v2699_v63, %v2099_v61  ;;  %v1811_v7 = vld [vmem:[#allocation10 + $0x40] sm:$0xf]  ;;  %v2104_v10 = vor.u32 %v2695_v2, %v2101_v3  ;;  %v2623_v12 = vld [vmem:[#allocation10 + $0x44] sm:$0xf]  ;;  %956 = vmatpush.bf16.msra.mxu0 %v1844_v4  ;;  %982 = vmatpush.bf16.msra.mxu2 %v1848_v6  ;;  %v2728_v50 = vld [vmem:[#allocation10 + $0x38c] sm:$0xf]  ;;  %v1984_v55 = vor.u32 %v2664_v48, %v1981_v49 }
  0x35   :  { %v2627_v8 = vld [vmem:[#allocation10 + $0x5c] sm:$0xf0]  ;;  %v1813_v13 = vld [vmem:[#allocation10 + $0x60] sm:$0xf0]  ;;  %v2237_v51 = vld [vmem:[#allocation10 + $0x3a8] sm:$0xf0] }
  0x36   :  { %v2067_v9 = vld [vmem:[#allocation10 + $0x240] sm:$0xf]  ;;  %v2687_v14 = vld [vmem:[#allocation10 + $0x244] sm:$0xf]  ;;  %v1812_v16 = vor.u32 %v2627_v8, %v1811_v7  ;;  %969 = vmatpush.bf16.msra.mxu1 %v2100_v5  ;;  %v1816_v20 = vor.u32 %v2623_v12, %v1813_v13  ;;  %995 = vmatpush.bf16.msra.mxu3 %v2104_v10  ;;  %v1947_v53 = vld [vmem:[#allocation10 + $0x148] sm:$0xf]  ;;  %v2240_v59 = vor.u32 %v2728_v50, %v2237_v51 }
  0x37   :  { %v2691_v11 = vld [vmem:[#allocation10 + $0x25c] sm:$0xf0]  ;;  %v2069_v15 = vld [vmem:[#allocation10 + $0x260] sm:$0xf0]  ;;  %v2660_v56 = vld [vmem:[#allocation10 + $0x164] sm:$0xf0] }
  0x38   :  { %v1779_v17 = vld [vmem:[#allocation10] sm:$0xf]  ;;  %v2068_v19 = vor.u32 %v2691_v11, %v2067_v9  ;;  %v2615_v23 = vld [vmem:[#allocation10 + $0x4] sm:$0xf]  ;;  %v2072_v24 = vor.u32 %v2687_v14, %v2069_v15  ;;  %957 = vmatpush.bf16.msra.mxu0 %v1812_v16  ;;  %983 = vmatpush.bf16.msra.mxu2 %v1816_v20  ;;  %v2203_v57 = vld [vmem:[#allocation10 + $0x348] sm:$0xf]  ;;  %v1948_v0 = vor.u32 %v2660_v56, %v1947_v53 }
  0x39   :  { %v2619_v18 = vld [vmem:[#allocation10 + $0x1c] sm:$0xf0]  ;;  %v1781_v25 = vld [vmem:[#allocation10 + $0x20] sm:$0xf0]  ;;  %v2724_v58 = vld [vmem:[#allocation10 + $0x364] sm:$0xf0] }
  0x3a   :  { %v2035_v21 = vld [vmem:[#allocation10 + $0x200] sm:$0xf]  ;;  %v2679_v26 = vld [vmem:[#allocation10 + $0x204] sm:$0xf]  ;;  %v1780_v31 = vor.u32 %v2619_v18, %v1779_v17  ;;  %970 = vmatpush.bf16.msra.mxu1 %v2068_v19  ;;  %v1784_v36 = vor.u32 %v2615_v23, %v1781_v25  ;;  %996 = vmatpush.bf16.msra.mxu3 %v2072_v24  ;;  %v2656_v60 = vld [vmem:[#allocation10 + $0x14c] sm:$0xf]  ;;  %v2204_v1 = vor.u32 %v2724_v58, %v2203_v57 }
  0x3b   :  { %v2683_v22 = vld [vmem:[#allocation10 + $0x21c] sm:$0xf0]  ;;  %v2037_v27 = vld [vmem:[#allocation10 + $0x220] sm:$0xf0]  ;;  %v1949_v61 = vld [vmem:[#allocation10 + $0x168] sm:$0xf0] }
  0x3c   :  { %v2036_v35 = vor.u32 %v2683_v22, %v2035_v21  ;;  %v2040_v39 = vor.u32 %v2679_v26, %v2037_v27  ;;  %958 = vmatpush.bf16.msra.mxu0 %v1780_v31  ;;  %984 = vmatpush.bf16.msra.mxu2 %v1784_v36  ;;  %v2720_v62 = vld [vmem:[#allocation10 + $0x34c] sm:$0xf]  ;;  %v115_v2 = vld [vmem:[#allocation5] sm:$0xff]  ;;  %v1952_v4 = vor.u32 %v2656_v60, %v1949_v61  ;;  %v1915_v5 = vld [vmem:[#allocation10 + $0x108] sm:$0xf] }
  0x3d   :  { %v2205_v63 = vld [vmem:[#allocation10 + $0x368] sm:$0xf0]  ;;  %v2652_v6 = vld [vmem:[#allocation10 + $0x124] sm:$0xf0]  ;;  %v3057_v8 = vpack.c.bf16 %v115_v2, %v115_v2  ;;  %v2275_v2 = vld [vmem:[#allocation10 + $0x3d0] sm:$0xf] }
  0x3e   :  { %971 = vmatpush.bf16.msra.mxu1 %v2036_v35  ;;  %997 = vmatpush.bf16.msra.mxu3 %v2040_v39  ;;  %v116_v3 = vld [vmem:[#allocation5 + $0x8] sm:$0xff]  ;;  %v2208_v10 = vor.u32 %v2720_v62, %v2205_v63  ;;  %v1916_v16 = vor.u32 %v2652_v6, %v1915_v5  ;;  %v2673_v5 = vld [vmem:[#allocation10 + $0x1d4] sm:$0xf] }
  0x3f   :  { %v2171_v7 = vld [vmem:[#allocation10 + $0x308] sm:$0xf]  ;;  %v3059_v9 = vpack.c.bf16 %v116_v3, %v116_v3  ;;  %v2648_v12 = vld [vmem:[#allocation10 + $0x10c] sm:$0xf]  ;;  %985 = vmatmul.bf16.vlgmr.msra.gmra.mxu2 %v3057_v8  ;;  %959 = vmatmul.bf16.vlgmr.msra.gmra.mxu0 %v3057_v8  ;;  %v2021_v6 = vld [vmem:[#allocation10 + $0x1f0] sm:$0xf0] }
  0x40   :  { %1003 = vmatpush.bf16.msrb.mxu0 %v2012_v40  ;;  %1029 = vmatpush.bf16.msrb.mxu2 %v2016_v42  ;;  %v2716_v11 = vld [vmem:[#allocation10 + $0x324] sm:$0xf0]  ;;  %v1917_v13 = vld [vmem:[#allocation10 + $0x128] sm:$0xf0] }
  0x41   :  { %v2712_v14 = vld [vmem:[#allocation10 + $0x30c] sm:$0xf]  ;;  %998 = vmatmul.bf16.vlgmr.msra.gmra.mxu3 %v3059_v9  ;;  %972 = vmatmul.bf16.vlgmr.msra.gmra.mxu1 %v3059_v9  ;;  %v2172_v17 = vor.u32 %v2716_v11, %v2171_v7  ;;  %v1920_v18 = vor.u32 %v2648_v12, %v1917_v13  ;;  %v1883_v19 = vld [vmem:[#allocation10 + $0xc8] sm:$0xf]  ;;  %v2737_v11 = vld [vmem:[#allocation10 + $0x3d4] sm:$0xf] }
  0x42   :  { %1016 = vmatpush.bf16.msrb.mxu1 %v2268_v41  ;;  %1042 = vmatpush.bf16.msrb.mxu3 %v2272_v46  ;;  %v2173_v15 = vld [vmem:[#allocation10 + $0x328] sm:$0xf0]  ;;  %v2644_v20 = vld [vmem:[#allocation10 + $0xe4] sm:$0xf0]  ;;  %v2277_v12 = vld [vmem:[#allocation10 + $0x3f0] sm:$0xf0] }
  0x43   :  { %v2139_v21 = vld [vmem:[#allocation10 + $0x2c8] sm:$0xf]  ;;  %v2176_v22 = vor.u32 %v2712_v14, %v2173_v15  ;;  %v2640_v24 = vld [vmem:[#allocation10 + $0xcc] sm:$0xf]  ;;  %v1884_v28 = vor.u32 %v2644_v20, %v1883_v19  ;;  %v2243_v19 = vld [vmem:[#allocation10 + $0x390] sm:$0xf]  ;;  %v2280_v20 = vor.u32 %v2737_v11, %v2277_v12 }
  0x44   :  { %1004 = vmatpush.bf16.msrb.mxu0 %v1980_v52  ;;  %1030 = vmatpush.bf16.msrb.mxu2 %v1984_v55  ;;  %v2708_v23 = vld [vmem:[#allocation10 + $0x2e4] sm:$0xf0]  ;;  %v1885_v25 = vld [vmem:[#allocation10 + $0xe8] sm:$0xf0]  ;;  %v2117_v11 = vld [vmem:[#allocation10 + $0x2b0] sm:$0xf0] }
  0x45   :  { %v2704_v26 = vld [vmem:[#allocation10 + $0x2cc] sm:$0xf]  ;;  %v2140_v29 = vor.u32 %v2708_v23, %v2139_v21  ;;  %v1888_v30 = vor.u32 %v2640_v24, %v1885_v25  ;;  %v1851_v31 = vld [vmem:[#allocation10 + $0x88] sm:$0xf]  ;;  %v2733_v21 = vld [vmem:[#allocation10 + $0x3ac] sm:$0xf0] }
  0x46   :  { %1017 = vmatpush.bf16.msrb.mxu1 %v2236_v54  ;;  %1043 = vmatpush.bf16.msrb.mxu3 %v2240_v59  ;;  %v2141_v27 = vld [vmem:[#allocation10 + $0x2e8] sm:$0xf0]  ;;  %v2636_v32 = vld [vmem:[#allocation10 + $0xa4] sm:$0xf0]  ;;  %v1989_v23 = vld [vmem:[#allocation10 + $0x1b0] sm:$0xf0] }
  0x47   :  { %v2107_v33 = vld [vmem:[#allocation10 + $0x288] sm:$0xf]  ;;  %v2144_v34 = vor.u32 %v2704_v26, %v2141_v27  ;;  %v2632_v36 = vld [vmem:[#allocation10 + $0x8c] sm:$0xf]  ;;  %v1852_v40 = vor.u32 %v2636_v32, %v1851_v31  ;;  %v2729_v24 = vld [vmem:[#allocation10 + $0x394] sm:$0xf]  ;;  %v2244_v27 = vor.u32 %v2733_v21, %v2243_v19 }
  0x48   :  { %1005 = vmatpush.bf16.msrb.mxu0 %v1948_v0  ;;  %1031 = vmatpush.bf16.msrb.mxu2 %v1952_v4  ;;  %v2700_v35 = vld [vmem:[#allocation10 + $0x2a4] sm:$0xf0]  ;;  %v1853_v37 = vld [vmem:[#allocation10 + $0xa8] sm:$0xf0]  ;;  %v2019_v0 = vld [vmem:[#allocation10 + $0x1d0] sm:$0xf] }
  0x49   :  { %v2696_v38 = vld [vmem:[#allocation10 + $0x28c] sm:$0xf]  ;;  %v2108_v41 = vor.u32 %v2700_v35, %v2107_v33  ;;  %v1856_v42 = vor.u32 %v2632_v36, %v1853_v37  ;;  %v1819_v43 = vld [vmem:[#allocation10 + $0x48] sm:$0xf]  ;;  %v2741_v4 = vld [vmem:[#allocation10 + $0x3ec] sm:$0xf0] }
  0x4a   :  { %1018 = vmatpush.bf16.msrb.mxu1 %v2204_v1  ;;  %1044 = vmatpush.bf16.msrb.mxu3 %v2208_v10  ;;  %v2109_v39 = vld [vmem:[#allocation10 + $0x2a8] sm:$0xf0]  ;;  %v2628_v44 = vld [vmem:[#allocation10 + $0x64] sm:$0xf0]  ;;  %v2677_v1 = vld [vmem:[#allocation10 + $0x1ec] sm:$0xf0]  ;;  %v2276_v15 = vor.u32 %v2741_v4, %v2275_v2 }
  0x4b   :  { %v2075_v45 = vld [vmem:[#allocation10 + $0x248] sm:$0xf]  ;;  %v2112_v46 = vor.u32 %v2696_v38, %v2109_v39  ;;  %v2624_v48 = vld [vmem:[#allocation10 + $0x4c] sm:$0xf]  ;;  %v1820_v52 = vor.u32 %v2628_v44, %v1819_v43  ;;  %v2020_v14 = vor.u32 %v2677_v1, %v2019_v0  ;;  %v2245_v25 = vld [vmem:[#allocation10 + $0x3b0] sm:$0xf0] }
  0x4c   :  { %1006 = vmatpush.bf16.msrb.mxu0 %v1916_v16  ;;  %1032 = vmatpush.bf16.msrb.mxu2 %v1920_v18  ;;  %v2692_v47 = vld [vmem:[#allocation10 + $0x264] sm:$0xf0]  ;;  %v1821_v49 = vld [vmem:[#allocation10 + $0x68] sm:$0xf0]  ;;  %v2024_v16 = vor.u32 %v2673_v5, %v2021_v6  ;;  %v2669_v18 = vld [vmem:[#allocation10 + $0x1ac] sm:$0xf0]  ;;  %v2248_v32 = vor.u32 %v2729_v24, %v2245_v25 }
  0x4d   :  { %v2688_v50 = vld [vmem:[#allocation10 + $0x24c] sm:$0xf]  ;;  %v1787_v53 = vld [vmem:[#allocation10 + $0x8] sm:$0xf]  ;;  %v2076_v55 = vor.u32 %v2692_v47, %v2075_v45  ;;  %v1824_v56 = vor.u32 %v2624_v48, %v1821_v49  ;;  %v2211_v31 = vld [vmem:[#allocation10 + $0x350] sm:$0xf] }
  0x4e   :  { %1019 = vmatpush.bf16.msrb.mxu1 %v2172_v17  ;;  %1045 = vmatpush.bf16.msrb.mxu3 %v2176_v22  ;;  %v2077_v51 = vld [vmem:[#allocation10 + $0x268] sm:$0xf0]  ;;  %v2620_v54 = vld [vmem:[#allocation10 + $0x24] sm:$0xf0]  ;;  %v1987_v17 = vld [vmem:[#allocation10 + $0x190] sm:$0xf] }
  0x4f   :  { %v2043_v57 = vld [vmem:[#allocation10 + $0x208] sm:$0xf]  ;;  %v2616_v59 = vld [vmem:[#allocation10 + $0xc] sm:$0xf]  ;;  %v2080_v60 = vor.u32 %v2688_v50, %v2077_v51  ;;  %v1788_v3 = vor.u32 %v2620_v54, %v1787_v53  ;;  %v2665_v22 = vld [vmem:[#allocation10 + $0x194] sm:$0xf]  ;;  %v1988_v26 = vor.u32 %v2669_v18, %v1987_v17 }
  0x50   :  { %1007 = vmatpush.bf16.msrb.mxu0 %v1884_v28  ;;  %1033 = vmatpush.bf16.msrb.mxu2 %v1888_v30  ;;  %v2684_v58 = vld [vmem:[#allocation10 + $0x224] sm:$0xf0]  ;;  %v1789_v61 = vld [vmem:[#allocation10 + $0x28] sm:$0xf0]  ;;  %v1992_v28 = vor.u32 %v2665_v22, %v1989_v23  ;;  %v2661_v30 = vld [vmem:[#allocation10 + $0x16c] sm:$0xf0] }
  0x51   :  { %v2680_v62 = vld [vmem:[#allocation10 + $0x20c] sm:$0xf]  ;;  %v2044_v7 = vor.u32 %v2684_v58, %v2043_v57  ;;  %v1792_v10 = vor.u32 %v2616_v59, %v1789_v61  ;;  %v2725_v33 = vld [vmem:[#allocation10 + $0x36c] sm:$0xf0]  ;;  %v1957_v35 = vld [vmem:[#allocation10 + $0x170] sm:$0xf0] }
  0x52   :  { %1020 = vmatpush.bf16.msrb.mxu1 %v2140_v29  ;;  %1046 = vmatpush.bf16.msrb.mxu3 %v2144_v34  ;;  %v2045_v63 = vld [vmem:[#allocation10 + $0x228] sm:$0xf0]  ;;  %v1955_v29 = vld [vmem:[#allocation10 + $0x150] sm:$0xf]  ;;  %v2657_v34 = vld [vmem:[#allocation10 + $0x154] sm:$0xf]  ;;  %v2212_v39 = vor.u32 %v2725_v33, %v2211_v31 }
  0x53   :  { %v2048_v13 = vor.u32 %v2680_v62, %v2045_v63  ;;  %v2721_v36 = vld [vmem:[#allocation10 + $0x354] sm:$0xf]  ;;  %v1956_v38 = vor.u32 %v2661_v30, %v1955_v29  ;;  %v2179_v43 = vld [vmem:[#allocation10 + $0x310] sm:$0xf] }
  0x54   :  { %1008 = vmatpush.bf16.msrb.mxu0 %v1852_v40  ;;  %1034 = vmatpush.bf16.msrb.mxu2 %v1856_v42  ;;  %v2213_v37 = vld [vmem:[#allocation10 + $0x370] sm:$0xf0]  ;;  %v1960_v40 = vor.u32 %v2657_v34, %v1957_v35  ;;  %v2653_v42 = vld [vmem:[#allocation10 + $0x12c] sm:$0xf0] }
  0x55   :  { %v2216_v44 = vor.u32 %v2721_v36, %v2213_v37  ;;  %v2717_v45 = vld [vmem:[#allocation10 + $0x32c] sm:$0xf0]  ;;  %v1925_v47 = vld [vmem:[#allocation10 + $0x130] sm:$0xf0]  ;;  %v2027_v36 = vld [vmem:[#allocation10 + $0x1d8] sm:$0xf] }
  0x56   :  { %1021 = vmatpush.bf16.msrb.mxu1 %v2108_v41  ;;  %1047 = vmatpush.bf16.msrb.mxu3 %v2112_v46  ;;  %v1923_v41 = vld [vmem:[#allocation10 + $0x110] sm:$0xf]  ;;  %v2649_v46 = vld [vmem:[#allocation10 + $0x114] sm:$0xf]  ;;  %v2180_v51 = vor.u32 %v2717_v45, %v2179_v43  ;;  %v2678_v37 = vld [vmem:[#allocation10 + $0x1f4] sm:$0xf0] }
  0x57   :  { %v2713_v48 = vld [vmem:[#allocation10 + $0x314] sm:$0xf]  ;;  %v1924_v50 = vor.u32 %v2653_v42, %v1923_v41  ;;  %v1891_v53 = vld [vmem:[#allocation10 + $0xd0] sm:$0xf]  ;;  %v2674_v41 = vld [vmem:[#allocation10 + $0x1dc] sm:$0xf] }
  0x58   :  { %1009 = vmatpush.bf16.msrb.mxu0 %v1820_v52  ;;  %1035 = vmatpush.bf16.msrb.mxu2 %v1824_v56  ;;  %v2181_v49 = vld [vmem:[#allocation10 + $0x330] sm:$0xf0]  ;;  %v1928_v52 = vor.u32 %v2649_v46, %v1925_v47  ;;  %v2645_v54 = vld [vmem:[#allocation10 + $0xec] sm:$0xf0]  ;;  %v2029_v42 = vld [vmem:[#allocation10 + $0x1f8] sm:$0xf0] }
  0x59   :  { %v2184_v56 = vor.u32 %v2713_v48, %v2181_v49  ;;  %v2709_v57 = vld [vmem:[#allocation10 + $0x2ec] sm:$0xf0]  ;;  %v2641_v58 = vld [vmem:[#allocation10 + $0xd4] sm:$0xf]  ;;  %v1892_v62 = vor.u32 %v2645_v54, %v1891_v53  ;;  %v2738_v45 = vld [vmem:[#allocation10 + $0x3dc] sm:$0xf]  ;;  %v2028_v48 = vor.u32 %v2678_v37, %v2027_v36 }
  0x5a   :  { %1022 = vmatpush.bf16.msrb.mxu1 %v2076_v55  ;;  %1048 = vmatpush.bf16.msrb.mxu3 %v2080_v60  ;;  %v2147_v55 = vld [vmem:[#allocation10 + $0x2d0] sm:$0xf]  ;;  %v1893_v59 = vld [vmem:[#allocation10 + $0xf0] sm:$0xf0]  ;;  %v2285_v46 = vld [vmem:[#allocation10 + $0x3f8] sm:$0xf0] }
  0x5b   :  { %v2705_v60 = vld [vmem:[#allocation10 + $0x2d4] sm:$0xf]  ;;  %v2148_v63 = vor.u32 %v2709_v57, %v2147_v55  ;;  %v1896_v0 = vor.u32 %v2641_v58, %v1893_v59  ;;  %v1859_v1 = vld [vmem:[#allocation10 + $0x90] sm:$0xf]  ;;  %v2251_v53 = vld [vmem:[#allocation10 + $0x398] sm:$0xf]  ;;  %v2288_v54 = vor.u32 %v2738_v45, %v2285_v46 }
  0x5c   :  { %1010 = vmatpush.bf16.msrb.mxu0 %v1788_v3  ;;  %1036 = vmatpush.bf16.msrb.mxu2 %v1792_v10  ;;  %v2149_v61 = vld [vmem:[#allocation10 + $0x2f0] sm:$0xf0]  ;;  %v2637_v2 = vld [vmem:[#allocation10 + $0xac] sm:$0xf0]  ;;  %v2734_v55 = vld [vmem:[#allocation10 + $0x3b4] sm:$0xf0] }
  0x5d   :  { %v2115_v3 = vld [vmem:[#allocation10 + $0x290] sm:$0xf]  ;;  %v2152_v4 = vor.u32 %v2705_v60, %v2149_v61  ;;  %v2633_v6 = vld [vmem:[#allocation10 + $0x94] sm:$0xf]  ;;  %v1860_v12 = vor.u32 %v2637_v2, %v1859_v1  ;;  %v1997_v57 = vld [vmem:[#allocation10 + $0x1b8] sm:$0xf0]  ;;  %v2252_v61 = vor.u32 %v2734_v55, %v2251_v53 }
  0x5e   :  { %1023 = vmatpush.bf16.msrb.mxu1 %v2044_v7  ;;  %1049 = vmatpush.bf16.msrb.mxu3 %v2048_v13  ;;  %v2701_v5 = vld [vmem:[#allocation10 + $0x2ac] sm:$0xf0]  ;;  %v1861_v7 = vld [vmem:[#allocation10 + $0xb0] sm:$0xf0]  ;;  %v2730_v58 = vld [vmem:[#allocation10 + $0x39c] sm:$0xf] }
  0x5f   :  { %1037 = vmatmul.bf16.vlgmr.msrb.gmra.mxu2 %v3057_v8  ;;  %1011 = vmatmul.bf16.vlgmr.msrb.gmra.mxu0 %v3057_v8  ;;  %v2697_v10 = vld [vmem:[#allocation10 + $0x294] sm:$0xf]  ;;  %v2116_v13 = vor.u32 %v2701_v5, %v2115_v3  ;;  %v2083_v17 = vld [vmem:[#allocation10 + $0x250] sm:$0xf]  ;;  %v2253_v59 = vld [vmem:[#allocation10 + $0x3b8] sm:$0xf0] }
  0x60   :  { %1055 = vmatpush.bf16.msra.mxu0 %v2020_v14  ;;  %1081 = vmatpush.bf16.msra.mxu2 %v2024_v16  ;;  %v1864_v14 = vor.u32 %v2633_v6, %v1861_v7  ;;  %v2629_v16 = vld [vmem:[#allocation10 + $0x6c] sm:$0xf0]  ;;  %v2120_v18 = vor.u32 %v2697_v10, %v2117_v11  ;;  %v1829_v21 = vld [vmem:[#allocation10 + $0x70] sm:$0xf0]  ;;  %v2219_v1 = vld [vmem:[#allocation10 + $0x358] sm:$0xf]  ;;  %v2256_v2 = vor.u32 %v2730_v58, %v2253_v59 }
  0x61   :  { %1050 = vmatmul.bf16.vlgmr.msrb.gmra.mxu3 %v3059_v9  ;;  %1024 = vmatmul.bf16.vlgmr.msrb.gmra.mxu1 %v3059_v9  ;;  %v2693_v19 = vld [vmem:[#allocation10 + $0x26c] sm:$0xf0]  ;;  %v2689_v22 = vld [vmem:[#allocation10 + $0x254] sm:$0xf]  ;;  %v2726_v3 = vld [vmem:[#allocation10 + $0x374] sm:$0xf0] }
  0x62   :  { %1068 = vmatpush.bf16.msra.mxu1 %v2276_v15  ;;  %1094 = vmatpush.bf16.msra.mxu3 %v2280_v20  ;;  %v1827_v15 = vld [vmem:[#allocation10 + $0x50] sm:$0xf]  ;;  %v2625_v20 = vld [vmem:[#allocation10 + $0x54] sm:$0xf]  ;;  %v1965_v5 = vld [vmem:[#allocation10 + $0x178] sm:$0xf0]  ;;  %v2220_v11 = vor.u32 %v2726_v3, %v2219_v1 }
  0x63   :  { %v2085_v23 = vld [vmem:[#allocation10 + $0x270] sm:$0xf0]  ;;  %v1828_v24 = vor.u32 %v2629_v16, %v1827_v15  ;;  %v1795_v25 = vld [vmem:[#allocation10 + $0x10] sm:$0xf]  ;;  %v2722_v6 = vld [vmem:[#allocation10 + $0x35c] sm:$0xf] }
  0x64   :  { %1056 = vmatpush.bf16.msra.mxu0 %v1988_v26  ;;  %1082 = vmatpush.bf16.msra.mxu2 %v1992_v28  ;;  %v2621_v26 = vld [vmem:[#allocation10 + $0x2c] sm:$0xf0]  ;;  %v1832_v28 = vor.u32 %v2625_v20, %v1829_v21  ;;  %v2617_v31 = vld [vmem:[#allocation10 + $0x14] sm:$0xf]  ;;  %v2221_v7 = vld [vmem:[#allocation10 + $0x378] sm:$0xf0] }
  0x65   :  { %v2051_v29 = vld [vmem:[#allocation10 + $0x210] sm:$0xf]  ;;  %v1797_v33 = vld [vmem:[#allocation10 + $0x30] sm:$0xf0]  ;;  %v2187_v15 = vld [vmem:[#allocation10 + $0x318] sm:$0xf]  ;;  %v2224_v16 = vor.u32 %v2722_v6, %v2221_v7 }
  0x66   :  { %1069 = vmatpush.bf16.msra.mxu1 %v2244_v27  ;;  %1095 = vmatpush.bf16.msra.mxu3 %v2248_v32  ;;  %v2084_v27 = vor.u32 %v2693_v19, %v2083_v17  ;;  %v2685_v30 = vld [vmem:[#allocation10 + $0x22c] sm:$0xf0]  ;;  %v2088_v32 = vor.u32 %v2689_v22, %v2085_v23  ;;  %v2681_v34 = vld [vmem:[#allocation10 + $0x214] sm:$0xf]  ;;  %v2718_v17 = vld [vmem:[#allocation10 + $0x334] sm:$0xf0] }
  0x67   :  { %v2053_v35 = vld [vmem:[#allocation10 + $0x230] sm:$0xf0]  ;;  %v2052_v43 = vor.u32 %v2685_v30, %v2051_v29  ;;  %v1933_v19 = vld [vmem:[#allocation10 + $0x138] sm:$0xf0]  ;;  %v2188_v23 = vor.u32 %v2718_v17, %v2187_v15  ;;  %v2710_v29 = vld [vmem:[#allocation10 + $0x2f4] sm:$0xf0] }
  0x68   :  { %1057 = vmatpush.bf16.msra.mxu0 %v1956_v38  ;;  %1083 = vmatpush.bf16.msra.mxu2 %v1960_v40  ;;  %v2283_v38 = vld [vmem:[#allocation10 + $0x3d8] sm:$0xf]  ;;  %v2056_v47 = vor.u32 %v2681_v34, %v2053_v35  ;;  %v2714_v20 = vld [vmem:[#allocation10 + $0x31c] sm:$0xf]  ;;  %v2515_v6 = vld [vmem:[#allocation8 + $0x1c0] sm:$0xf] }
  0x69   :  { %v2742_v40 = vld [vmem:[#allocation10 + $0x3f4] sm:$0xf0]  ;;  %v2189_v21 = vld [vmem:[#allocation10 + $0x338] sm:$0xf0]  ;;  %v2611_v7 = vld [vmem:[#allocation8 + $0x1dc] sm:$0xf0] }
  0x6a   :  { %1070 = vmatpush.bf16.msra.mxu1 %v2212_v39  ;;  %1096 = vmatpush.bf16.msra.mxu3 %v2216_v44  ;;  %v1796_v39 = vor.u32 %v2621_v26, %v1795_v25  ;;  %v1800_v44 = vor.u32 %v2617_v31, %v1797_v33  ;;  %v2284_v49 = vor.u32 %v2742_v40, %v2283_v38  ;;  %v1899_v25 = vld [vmem:[#allocation10 + $0xd8] sm:$0xf]  ;;  %v2642_v30 = vld [vmem:[#allocation10 + $0xdc] sm:$0xf]  ;;  %v2608_v17 = vld [vmem:[#allocation8 + $0x1cc] sm:$0xf] }
  0x6b   :  { %v2646_v26 = vld [vmem:[#allocation10 + $0xf4] sm:$0xf0]  ;;  %v1901_v31 = vld [vmem:[#allocation10 + $0xf8] sm:$0xf0] }
  0x6c   :  { %1058 = vmatpush.bf16.msra.mxu0 %v1924_v50  ;;  %1084 = vmatpush.bf16.msra.mxu2 %v1928_v52  ;;  %v2032_v50 = vor.u32 %v2674_v41, %v2029_v42  ;;  %v2670_v52 = vld [vmem:[#allocation10 + $0x1b4] sm:$0xf0]  ;;  %v2157_v33 = vld [vmem:[#allocation10 + $0x2f8] sm:$0xf0]  ;;  %v1900_v34 = vor.u32 %v2646_v26, %v1899_v25  ;;  %v1904_v36 = vor.u32 %v2642_v30, %v1901_v31  ;;  %v2599_v25 = vld [vmem:[#allocation8 + $0x184] sm:$0xf] }
  0x6d   :  { %v1867_v37 = vld [vmem:[#allocation10 + $0x98] sm:$0xf]  ;;  %v2634_v42 = vld [vmem:[#allocation10 + $0x9c] sm:$0xf]  ;;  %v2600_v30 = vld [vmem:[#allocation8 + $0x18c] sm:$0xf] }
  0x6e   :  { %1071 = vmatpush.bf16.msra.mxu1 %v2180_v51  ;;  %1097 = vmatpush.bf16.msra.mxu3 %v2184_v56  ;;  %v1995_v51 = vld [vmem:[#allocation10 + $0x198] sm:$0xf]  ;;  %v2666_v56 = vld [vmem:[#allocation10 + $0x19c] sm:$0xf]  ;;  %v2493_v31 = vld [vmem:[#allocation8 + $0x1a8] sm:$0xf0] }
  0x6f   :  { %v1996_v60 = vor.u32 %v2670_v52, %v1995_v51  ;;  %v2638_v38 = vld [vmem:[#allocation10 + $0xb4] sm:$0xf0]  ;;  %v2125_v45 = vld [vmem:[#allocation10 + $0x2b8] sm:$0xf0] }
  0x70   :  { %1059 = vmatpush.bf16.msra.mxu0 %v1892_v62  ;;  %1085 = vmatpush.bf16.msra.mxu2 %v1896_v0  ;;  %v2000_v62 = vor.u32 %v2666_v56, %v1997_v57  ;;  %v2662_v0 = vld [vmem:[#allocation10 + $0x174] sm:$0xf0]  ;;  %v1868_v46 = vor.u32 %v2638_v38, %v1867_v37  ;;  %v1837_v55 = vld [vmem:[#allocation10 + $0x78] sm:$0xf0]  ;;  %v2591_v37 = vld [vmem:[#allocation8 + $0x144] sm:$0xf]  ;;  %v2496_v38 = vor.u32 %v2600_v30, %v2493_v31 }
  0x71   :  { %v2702_v41 = vld [vmem:[#allocation10 + $0x2b4] sm:$0xf0]  ;;  %v2690_v56 = vld [vmem:[#allocation10 + $0x25c] sm:$0xf]  ;;  %v2555_v30 = vld [vmem:[#allocation8 + $0x1c] sm:$0xf0] }
  0x72   :  { %1072 = vmatpush.bf16.msra.mxu1 %v2148_v63  ;;  %1098 = vmatpush.bf16.msra.mxu3 %v2152_v4  ;;  %v1963_v63 = vld [vmem:[#allocation10 + $0x158] sm:$0xf]  ;;  %v2658_v4 = vld [vmem:[#allocation10 + $0x15c] sm:$0xf] }
  0x73   :  { %v1964_v10 = vor.u32 %v2662_v0, %v1963_v63  ;;  %v2091_v51 = vld [vmem:[#allocation10 + $0x258] sm:$0xf]  ;;  %v2093_v57 = vld [vmem:[#allocation10 + $0x278] sm:$0xf0] }
  0x74   :  { %1060 = vmatpush.bf16.msra.mxu0 %v1860_v12  ;;  %1086 = vmatpush.bf16.msra.mxu2 %v1864_v14  ;;  %v1968_v12 = vor.u32 %v2658_v4, %v1965_v5  ;;  %v2654_v14 = vld [vmem:[#allocation10 + $0x134] sm:$0xf0]  ;;  %v2618_v1 = vld [vmem:[#allocation10 + $0x1c] sm:$0xf] }
  0x75   :  { %v2694_v53 = vld [vmem:[#allocation10 + $0x274] sm:$0xf0]  ;;  %v1805_v3 = vld [vmem:[#allocation10 + $0x38] sm:$0xf0] }
  0x76   :  { %1073 = vmatpush.bf16.msra.mxu1 %v2116_v13  ;;  %1099 = vmatpush.bf16.msra.mxu3 %v2120_v18  ;;  %v1931_v13 = vld [vmem:[#allocation10 + $0x118] sm:$0xf]  ;;  %v2650_v18 = vld [vmem:[#allocation10 + $0x11c] sm:$0xf] }
  0x77   :  { %v1932_v22 = vor.u32 %v2654_v14, %v1931_v13  ;;  %v1803_v59 = vld [vmem:[#allocation10 + $0x18] sm:$0xf]  ;;  %v2682_v4 = vld [vmem:[#allocation10 + $0x21c] sm:$0xf]  ;;  %v2523_v13 = vld [vmem:[#allocation8 + $0x1c8] sm:$0xf] }
  0x78   :  { %1061 = vmatpush.bf16.msra.mxu0 %v1828_v24  ;;  %1087 = vmatpush.bf16.msra.mxu2 %v1832_v28  ;;  %v1936_v24 = vor.u32 %v2650_v18, %v1933_v19  ;;  %v2192_v28 = vor.u32 %v2714_v20, %v2189_v21  ;;  %v2059_v63 = vld [vmem:[#allocation10 + $0x218] sm:$0xf]  ;;  %v2061_v5 = vld [vmem:[#allocation10 + $0x238] sm:$0xf0]  ;;  %v2612_v14 = vld [vmem:[#allocation8 + $0x1e4] sm:$0xf0]  ;;  %v2516_v20 = vor.u32 %v2611_v7, %v2515_v6 }
  0x79   :  { %v2686_v0 = vld [vmem:[#allocation10 + $0x234] sm:$0xf0]  ;;  %v2525_v18 = vld [vmem:[#allocation8 + $0x1e8] sm:$0xf0]  ;;  %v2064_v19 = vor.u32 %v2682_v4, %v2061_v5  ;;  %v2355_v5 = vld [vmem:[#allocation8 + $0x80] sm:$0xf] }
  0x7a   :  { %1074 = vmatpush.bf16.msra.mxu1 %v2084_v27  ;;  %1100 = vmatpush.bf16.msra.mxu3 %v2088_v32  ;;  %v2155_v27 = vld [vmem:[#allocation10 + $0x2d8] sm:$0xf]  ;;  %v2706_v32 = vld [vmem:[#allocation10 + $0x2dc] sm:$0xf]  ;;  %v2060_v15 = vor.u32 %v2686_v0, %v2059_v63  ;;  %v2528_v26 = vor.u32 %v2608_v17, %v2525_v18  ;;  %v2580_v63 = vld [vmem:[#allocation8 + $0xe4] sm:$0xf0] }
  0x7b   :  { %v2156_v35 = vor.u32 %v2710_v29, %v2155_v27  ;;  %v2160_v40 = vor.u32 %v2706_v32, %v2157_v33  ;;  %v2485_v27 = vld [vmem:[#allocation8 + $0x1a0] sm:$0xf0]  ;;  %v2604_v29 = vld [vmem:[#allocation8 + $0x1a4] sm:$0xf0]  ;;  %v2576_v0 = vld [vmem:[#allocation8 + $0xcc] sm:$0xf] }
  0x7c   :  { %1062 = vmatpush.bf16.msra.mxu0 %v1796_v39  ;;  %1088 = vmatpush.bf16.msra.mxu2 %v1800_v44  ;;  %v2123_v39 = vld [vmem:[#allocation10 + $0x298] sm:$0xf]  ;;  %v2698_v44 = vld [vmem:[#allocation10 + $0x29c] sm:$0xf]  ;;  %v2488_v33 = vor.u32 %v2599_v25, %v2485_v27  ;;  %v2571_v6 = vld [vmem:[#allocation8 + $0x9c] sm:$0xf0] }
  0x7d   :  { %v2128_v52 = vor.u32 %v2698_v44, %v2125_v45  ;;  %v2567_v7 = vld [vmem:[#allocation8 + $0x84] sm:$0xf]  ;;  %v2564_v25 = vld [vmem:[#allocation8 + $0x64] sm:$0xf0]  ;;  %v2333_v27 = vld [vmem:[#allocation8 + $0x68] sm:$0xf0] }
  0x7e   :  { %1075 = vmatpush.bf16.msra.mxu1 %v2052_v43  ;;  %1101 = vmatpush.bf16.msra.mxu3 %v2056_v47  ;;  %v1869_v43 = vld [vmem:[#allocation10 + $0xb8] sm:$0xf0]  ;;  %v2124_v47 = vor.u32 %v2702_v41, %v2123_v39  ;;  %v2453_v39 = vld [vmem:[#allocation8 + $0x160] sm:$0xf0]  ;;  %v2596_v41 = vld [vmem:[#allocation8 + $0x164] sm:$0xf0] }
  0x7f   :  { %1089 = vmatmul.bf16.vlgmr.msra.gmra.mxu2 %v3057_v8  ;;  %1063 = vmatmul.bf16.vlgmr.msra.gmra.mxu0 %v3057_v8  ;;  %v2456_v45 = vor.u32 %v2591_v37, %v2453_v39  ;;  %v2556_v37 = vld [vmem:[#allocation8 + $0x24] sm:$0xf0]  ;;  %v2301_v39 = vld [vmem:[#allocation8 + $0x28] sm:$0xf0] }
  0x80   :  { %1107 = vmatpush.bf16.msrb.mxu0 %v2028_v48  ;;  %1133 = vmatpush.bf16.msrb.mxu2 %v2032_v50  ;;  %v1872_v48 = vor.u32 %v2634_v42, %v1869_v43  ;;  %v2630_v50 = vld [vmem:[#allocation10 + $0x74] sm:$0xf0]  ;;  %v2592_v42 = vld [vmem:[#allocation8 + $0x14c] sm:$0xf] }
  0x81   :  { %1102 = vmatmul.bf16.vlgmr.msra.gmra.mxu3 %v3059_v9  ;;  %1076 = vmatmul.bf16.vlgmr.msra.gmra.mxu1 %v3059_v9  ;;  %v2461_v43 = vld [vmem:[#allocation8 + $0x168] sm:$0xf0] }
  0x82   :  { %1120 = vmatpush.bf16.msrb.mxu1 %v2284_v49  ;;  %1146 = vmatpush.bf16.msrb.mxu3 %v2288_v54  ;;  %v1835_v49 = vld [vmem:[#allocation10 + $0x58] sm:$0xf]  ;;  %v2626_v54 = vld [vmem:[#allocation10 + $0x5c] sm:$0xf] }
  0x83   :  { %v1836_v58 = vor.u32 %v2630_v50, %v1835_v49  ;;  %v2583_v49 = vld [vmem:[#allocation8 + $0x104] sm:$0xf]  ;;  %v2464_v50 = vor.u32 %v2592_v42, %v2461_v43  ;;  %v2609_v42 = vld [vmem:[#allocation8 + $0x1d4] sm:$0xf] }
  0x84   :  { %1108 = vmatpush.bf16.msrb.mxu0 %v1996_v60  ;;  %1134 = vmatpush.bf16.msrb.mxu2 %v2000_v62  ;;  %v2622_v60 = vld [vmem:[#allocation10 + $0x34] sm:$0xf0]  ;;  %v1840_v62 = vor.u32 %v2626_v54, %v1837_v55  ;;  %v2584_v54 = vld [vmem:[#allocation8 + $0x10c] sm:$0xf] }
  0x85   :  { %v2429_v55 = vld [vmem:[#allocation8 + $0x128] sm:$0xf0] }
  0x86   :  { %1121 = vmatpush.bf16.msrb.mxu1 %v2252_v61  ;;  %1147 = vmatpush.bf16.msrb.mxu3 %v2256_v2  ;;  %v2092_v61 = vor.u32 %v2694_v53, %v2091_v51  ;;  %v2096_v2 = vor.u32 %v2690_v56, %v2093_v57  ;;  %v2421_v51 = vld [vmem:[#allocation8 + $0x120] sm:$0xf0]  ;;  %v2588_v53 = vld [vmem:[#allocation8 + $0x124] sm:$0xf0]  ;;  %v2387_v57 = vld [vmem:[#allocation8 + $0xc0] sm:$0xf] }
  0x87   :  { %v2424_v56 = vor.u32 %v2583_v49, %v2421_v51  ;;  %v2610_v49 = vld [vmem:[#allocation8 + $0x1dc] sm:$0xf] }
  0x88   :  { %1109 = vmatpush.bf16.msrb.mxu0 %v1964_v10  ;;  %1135 = vmatpush.bf16.msrb.mxu2 %v1968_v12  ;;  %v2607_v10 = vld [vmem:[#allocation8 + $0x1c4] sm:$0xf]  ;;  %v113_v51 = vld [vmem:[#allocation2] sm:$0xff] }
  0x89   :  { %v2517_v12 = vld [vmem:[#allocation8 + $0x1e0] sm:$0xf0] }
  0x8a   :  { %1122 = vmatpush.bf16.msrb.mxu1 %v2220_v11  ;;  %1148 = vmatpush.bf16.msrb.mxu3 %v2224_v16  ;;  %v1804_v11 = vor.u32 %v2622_v60, %v1803_v59  ;;  %v1808_v16 = vor.u32 %v2618_v1, %v1805_v3  ;;  %v2520_v21 = vor.u32 %v2607_v10, %v2517_v12  ;;  %v2575_v59 = vld [vmem:[#allocation8 + $0xc4] sm:$0xf]  ;;  %v2397_v1 = vld [vmem:[#allocation8 + $0xe8] sm:$0xf0]  ;;  %v2363_v12 = vld [vmem:[#allocation8 + $0x88] sm:$0xf] }
  0x8b   :  { %v2432_v60 = vor.u32 %v2584_v54, %v2429_v55  ;;  %v2400_v10 = vor.u32 %v2576_v0, %v2397_v1 }
  0x8c   :  { %1110 = vmatpush.bf16.msrb.mxu0 %v1932_v22  ;;  %1136 = vmatpush.bf16.msrb.mxu2 %v1936_v24  ;;  %v2524_v22 = vor.u32 %v2612_v14, %v2523_v13  ;;  %v2603_v24 = vld [vmem:[#allocation8 + $0x19c] sm:$0xf0]  ;;  %v2572_v13 = vld [vmem:[#allocation8 + $0xa4] sm:$0xf0]  ;;  %v2568_v14 = vld [vmem:[#allocation8 + $0x8c] sm:$0xf] }
  0x8d   :  { %v2364_v18 = vor.u32 %v2572_v13, %v2363_v12  ;;  %v2594_v12 = vld [vmem:[#allocation8 + $0x15c] sm:$0xf] }
  0x8e   :  { %1123 = vmatpush.bf16.msrb.mxu1 %v2188_v23  ;;  %1149 = vmatpush.bf16.msrb.mxu3 %v2192_v28  ;;  %v2483_v23 = vld [vmem:[#allocation8 + $0x180] sm:$0xf]  ;;  %v2491_v28 = vld [vmem:[#allocation8 + $0x188] sm:$0xf]  ;;  %v2477_v13 = vld [vmem:[#allocation8 + $0x178] sm:$0xf0] }
  0x8f   :  { %v2484_v32 = vor.u32 %v2603_v24, %v2483_v23  ;;  %v2325_v23 = vld [vmem:[#allocation8 + $0x60] sm:$0xf0]  ;;  %v2331_v24 = vld [vmem:[#allocation8 + $0x48] sm:$0xf] }
  0x90   :  { %1111 = vmatpush.bf16.msrb.mxu0 %v1900_v34  ;;  %1137 = vmatpush.bf16.msrb.mxu2 %v1904_v36  ;;  %v2492_v34 = vor.u32 %v2604_v29, %v2491_v28  ;;  %v2595_v36 = vld [vmem:[#allocation8 + $0x15c] sm:$0xf0] }
  0x91   :  { %v2291_v29 = vld [vmem:[#allocation8] sm:$0xf] }
  0x92   :  { %1124 = vmatpush.bf16.msrb.mxu1 %v2156_v35  ;;  %1150 = vmatpush.bf16.msrb.mxu3 %v2160_v40  ;;  %v2451_v35 = vld [vmem:[#allocation8 + $0x140] sm:$0xf]  ;;  %v2459_v40 = vld [vmem:[#allocation8 + $0x148] sm:$0xf]  ;;  %v2292_v43 = vor.u32 %v2555_v30, %v2291_v29  ;;  %v2403_v29 = vld [vmem:[#allocation8 + $0xd0] sm:$0xf] }
  0x93   :  { %v2452_v44 = vor.u32 %v2595_v36, %v2451_v35  ;;  %v2299_v35 = vld [vmem:[#allocation8 + $0x8] sm:$0xf]  ;;  %v2581_v30 = vld [vmem:[#allocation8 + $0xec] sm:$0xf0] }
  0x94   :  { %1112 = vmatpush.bf16.msrb.mxu0 %v1868_v46  ;;  %1138 = vmatpush.bf16.msrb.mxu2 %v1872_v48  ;;  %v2460_v46 = vor.u32 %v2596_v41, %v2459_v40  ;;  %v2587_v48 = vld [vmem:[#allocation8 + $0x11c] sm:$0xf0]  ;;  %v2531_v40 = vld [vmem:[#allocation8 + $0x1d0] sm:$0xf] }
  0x95   :  { %v2613_v41 = vld [vmem:[#allocation8 + $0x1ec] sm:$0xf0] }
  0x96   :  { %1125 = vmatpush.bf16.msrb.mxu1 %v2124_v47  ;;  %1151 = vmatpush.bf16.msrb.mxu3 %v2128_v52  ;;  %v2419_v47 = vld [vmem:[#allocation8 + $0x100] sm:$0xf]  ;;  %v2427_v52 = vld [vmem:[#allocation8 + $0x108] sm:$0xf] }
  0x98   :  { %1113 = vmatpush.bf16.msrb.mxu0 %v1836_v58  ;;  %1139 = vmatpush.bf16.msrb.mxu2 %v1840_v62  ;;  %v2579_v58 = vld [vmem:[#allocation8 + $0xdc] sm:$0xf0]  ;;  %v2395_v62 = vld [vmem:[#allocation8 + $0xc8] sm:$0xf] }
  0x99   :  { %v2396_v4 = vor.u32 %v2580_v63, %v2395_v62  ;;  %v2602_v62 = vld [vmem:[#allocation8 + $0x19c] sm:$0xf] }
  0x9a   :  { %1126 = vmatpush.bf16.msrb.mxu1 %v2092_v61  ;;  %1152 = vmatpush.bf16.msrb.mxu3 %v2096_v2  ;;  %v2389_v61 = vld [vmem:[#allocation8 + $0xe0] sm:$0xf0]  ;;  %v2388_v2 = vor.u32 %v2579_v58, %v2387_v57  ;;  %v3077_v58 = vpack.c.bf16 %v113_v51, %v113_v51  ;;  %v2509_v63 = vld [vmem:[#allocation8 + $0x1b8] sm:$0xf0] }
  0x9b   :  { %v2392_v3 = vor.u32 %v2575_v59, %v2389_v61  ;;  %v2501_v59 = vld [vmem:[#allocation8 + $0x1b0] sm:$0xf0]  ;;  %v2606_v61 = vld [vmem:[#allocation8 + $0x1b4] sm:$0xf0] }
  0x9c   :  { %1114 = vmatpush.bf16.msrb.mxu0 %v1804_v11  ;;  %1140 = vmatpush.bf16.msrb.mxu2 %v1808_v16  ;;  %v2357_v11 = vld [vmem:[#allocation8 + $0xa0] sm:$0xf0]  ;;  %v2356_v16 = vor.u32 %v2571_v6, %v2355_v5  ;;  %v2593_v5 = vld [vmem:[#allocation8 + $0x154] sm:$0xf]  ;;  %v2512_v6 = vor.u32 %v2602_v62, %v2509_v63 }
  0x9d   :  { %v2360_v17 = vor.u32 %v2567_v7, %v2357_v11  ;;  %v2469_v7 = vld [vmem:[#allocation8 + $0x170] sm:$0xf0]  ;;  %v2598_v11 = vld [vmem:[#allocation8 + $0x174] sm:$0xf0] }
  0x9e   :  { %1127 = vmatpush.bf16.msrb.mxu1 %v2060_v15  ;;  %1153 = vmatpush.bf16.msrb.mxu3 %v2064_v19  ;;  %v2365_v15 = vld [vmem:[#allocation8 + $0xa8] sm:$0xf0]  ;;  %v2323_v19 = vld [vmem:[#allocation8 + $0x40] sm:$0xf] }
  0x9f   :  { %1115 = vmatmul.bf16.vlgmr.msrb.gmra.mxu0 %v3057_v8  ;;  %1141 = vmatmul.bf16.vlgmr.msrb.gmra.mxu2 %v3057_v8  ;;  %v2420_v8 = vor.u32 %v2587_v48, %v2419_v47  ;;  %v2300_v48 = vor.u32 %v2556_v37, %v2299_v35  ;;  %v2582_v35 = vld [vmem:[#allocation8 + $0xf4] sm:$0xf0]  ;;  %v2413_v37 = vld [vmem:[#allocation8 + $0xf8] sm:$0xf0] }
  0xa0   :  { %1479 = vmatpush.bf16.msra.mxu0 %v2516_v20  ;;  %1505 = vmatpush.bf16.msra.mxu2 %v2524_v22  ;;  %v2563_v20 = vld [vmem:[#allocation8 + $0x5c] sm:$0xf0]  ;;  %v2368_v22 = vor.u32 %v2568_v14, %v2365_v15  ;;  %v2472_v15 = vor.u32 %v2593_v5, %v2469_v7  ;;  %v2557_v7 = vld [vmem:[#allocation8 + $0x2c] sm:$0xf0] }
  0xa1   :  { %1128 = vmatmul.bf16.vlgmr.msrb.gmra.mxu1 %v3059_v9  ;;  %1154 = vmatmul.bf16.vlgmr.msrb.gmra.mxu3 %v3059_v9  ;;  %v2428_v9 = vor.u32 %v2588_v53, %v2427_v52  ;;  %v2324_v28 = vor.u32 %v2563_v20, %v2323_v19  ;;  %v2532_v53 = vor.u32 %v2613_v41, %v2531_v40  ;;  %v2585_v19 = vld [vmem:[#allocation8 + $0x114] sm:$0xf]  ;;  %v2371_v41 = vld [vmem:[#allocation8 + $0x90] sm:$0xf] }
  0xa2   :  { %1492 = vmatpush.bf16.msra.mxu1 %v2520_v21  ;;  %1518 = vmatpush.bf16.msra.mxu3 %v2528_v26  ;;  %v2559_v21 = vld [vmem:[#allocation8 + $0x44] sm:$0xf]  ;;  %v2560_v26 = vld [vmem:[#allocation8 + $0x4c] sm:$0xf]  ;;  %v2480_v20 = vor.u32 %v2594_v12, %v2477_v13  ;;  %v2309_v13 = vld [vmem:[#allocation8 + $0x30] sm:$0xf0] }
  0xa3   :  { %v2328_v31 = vor.u32 %v2559_v21, %v2325_v23  ;;  %v2336_v36 = vor.u32 %v2560_v26, %v2333_v27  ;;  %v2437_v21 = vld [vmem:[#allocation8 + $0x130] sm:$0xf0]  ;;  %v2590_v23 = vld [vmem:[#allocation8 + $0x134] sm:$0xf0] }
  0xa4   :  { %1480 = vmatpush.bf16.msra.mxu0 %v2484_v32  ;;  %1506 = vmatpush.bf16.msra.mxu2 %v2492_v34  ;;  %v2332_v32 = vor.u32 %v2564_v25, %v2331_v24  ;;  %v2293_v34 = vld [vmem:[#allocation8 + $0x20] sm:$0xf0]  ;;  %v2586_v24 = vld [vmem:[#allocation8 + $0x11c] sm:$0xf]  ;;  %v2440_v27 = vor.u32 %v2585_v19, %v2437_v21 }
  0xa5   :  { %v2445_v25 = vld [vmem:[#allocation8 + $0x138] sm:$0xf0] }
  0xa6   :  { %1493 = vmatpush.bf16.msra.mxu1 %v2488_v33  ;;  %1519 = vmatpush.bf16.msra.mxu3 %v2496_v38  ;;  %v2551_v33 = vld [vmem:[#allocation8 + $0x4] sm:$0xf]  ;;  %v2552_v38 = vld [vmem:[#allocation8 + $0xc] sm:$0xf] }
  0xa7   :  { %v2296_v47 = vor.u32 %v2551_v33, %v2293_v34  ;;  %v2304_v52 = vor.u32 %v2552_v38, %v2301_v39  ;;  %v2405_v33 = vld [vmem:[#allocation8 + $0xf0] sm:$0xf0]  ;;  %v2411_v34 = vld [vmem:[#allocation8 + $0xd8] sm:$0xf]  ;;  %v2404_v38 = vor.u32 %v2581_v30, %v2403_v29 }
  0xa8   :  { %1481 = vmatpush.bf16.msra.mxu0 %v2452_v44  ;;  %1507 = vmatpush.bf16.msra.mxu2 %v2460_v46  ;;  %v2533_v44 = vld [vmem:[#allocation8 + $0x1f0] sm:$0xf0]  ;;  %v2614_v46 = vld [vmem:[#allocation8 + $0x1f4] sm:$0xf0]  ;;  %v2412_v40 = vor.u32 %v2582_v35, %v2411_v34 }
  0xa9   :  { %v2536_v54 = vor.u32 %v2609_v42, %v2533_v44  ;;  %v2573_v42 = vld [vmem:[#allocation8 + $0xac] sm:$0xf0] }
  0xaa   :  { %1494 = vmatpush.bf16.msra.mxu1 %v2456_v45  ;;  %1520 = vmatpush.bf16.msra.mxu3 %v2464_v50  ;;  %v2539_v45 = vld [vmem:[#allocation8 + $0x1d8] sm:$0xf]  ;;  %v2541_v50 = vld [vmem:[#allocation8 + $0x1f8] sm:$0xf0] }
  0xab   :  { %v2540_v55 = vor.u32 %v2614_v46, %v2539_v45  ;;  %v2544_v57 = vor.u32 %v2610_v49, %v2541_v50  ;;  %v2373_v46 = vld [vmem:[#allocation8 + $0xb0] sm:$0xf0]  ;;  %v2570_v49 = vld [vmem:[#allocation8 + $0x9c] sm:$0xf] }
  0xac   :  { %1482 = vmatpush.bf16.msra.mxu0 %v2420_v8  ;;  %1508 = vmatpush.bf16.msra.mxu2 %v2428_v9  ;;  %v2499_v8 = vld [vmem:[#allocation8 + $0x190] sm:$0xf]  ;;  %v2601_v9 = vld [vmem:[#allocation8 + $0x194] sm:$0xf]  ;;  %v2381_v50 = vld [vmem:[#allocation8 + $0xb8] sm:$0xf0] }
  0xad   :  { %v2504_v1 = vor.u32 %v2601_v9, %v2501_v59  ;;  %v2561_v9 = vld [vmem:[#allocation8 + $0x54] sm:$0xf] }
  0xae   :  { %1495 = vmatpush.bf16.msra.mxu1 %v2424_v56  ;;  %1521 = vmatpush.bf16.msra.mxu3 %v2432_v60  ;;  %v2605_v56 = vld [vmem:[#allocation8 + $0x1ac] sm:$0xf0]  ;;  %v2507_v60 = vld [vmem:[#allocation8 + $0x198] sm:$0xf]  ;;  %v2341_v59 = vld [vmem:[#allocation8 + $0x70] sm:$0xf0] }
  0xaf   :  { %v2500_v0 = vor.u32 %v2605_v56, %v2499_v8  ;;  %v2339_v8 = vld [vmem:[#allocation8 + $0x50] sm:$0xf] }
  0xb0   :  { %1483 = vmatpush.bf16.msra.mxu0 %v2388_v2  ;;  %1509 = vmatpush.bf16.msra.mxu2 %v2396_v4  ;;  %v2508_v2 = vor.u32 %v2606_v61, %v2507_v60  ;;  %v2597_v4 = vld [vmem:[#allocation8 + $0x16c] sm:$0xf0]  ;;  %v2347_v60 = vld [vmem:[#allocation8 + $0x58] sm:$0xf] }
  0xb1   :  { %v2565_v56 = vld [vmem:[#allocation8 + $0x6c] sm:$0xf0]  ;;  %v2566_v61 = vld [vmem:[#allocation8 + $0x74] sm:$0xf0] }
  0xb2   :  { %1496 = vmatpush.bf16.msra.mxu1 %v2392_v3  ;;  %1522 = vmatpush.bf16.msra.mxu3 %v2400_v10  ;;  %v2467_v3 = vld [vmem:[#allocation8 + $0x150] sm:$0xf]  ;;  %v2475_v10 = vld [vmem:[#allocation8 + $0x158] sm:$0xf]  ;;  %v2348_v5 = vor.u32 %v2566_v61, %v2347_v60 }
  0xb3   :  { %v2468_v14 = vor.u32 %v2597_v4, %v2467_v3  ;;  %v2340_v3 = vor.u32 %v2565_v56, %v2339_v8  ;;  %v2344_v4 = vor.u32 %v2561_v9, %v2341_v59 }
  0xb4   :  { %1484 = vmatpush.bf16.msra.mxu0 %v2356_v16  ;;  %1510 = vmatpush.bf16.msra.mxu2 %v2364_v18  ;;  %v2476_v16 = vor.u32 %v2598_v11, %v2475_v10  ;;  %v2589_v18 = vld [vmem:[#allocation8 + $0x12c] sm:$0xf0]  ;;  %v2553_v10 = vld [vmem:[#allocation8 + $0x14] sm:$0xf] }
  0xb6   :  { %1497 = vmatpush.bf16.msra.mxu1 %v2360_v17  ;;  %1523 = vmatpush.bf16.msra.mxu3 %v2368_v22  ;;  %v2435_v17 = vld [vmem:[#allocation8 + $0x110] sm:$0xf]  ;;  %v2443_v22 = vld [vmem:[#allocation8 + $0x118] sm:$0xf] }
  0xb7   :  { %v2436_v26 = vor.u32 %v2589_v18, %v2435_v17  ;;  %v2317_v17 = vld [vmem:[#allocation8 + $0x38] sm:$0xf0] }
  0xb8   :  { %1485 = vmatpush.bf16.msra.mxu0 %v2324_v28  ;;  %1511 = vmatpush.bf16.msra.mxu2 %v2332_v32  ;;  %v2444_v28 = vor.u32 %v2590_v23, %v2443_v22  ;;  %v2448_v32 = vor.u32 %v2586_v24, %v2445_v25 }
  0xba   :  { %1498 = vmatpush.bf16.msra.mxu1 %v2328_v31  ;;  %1524 = vmatpush.bf16.msra.mxu3 %v2336_v36  ;;  %v2577_v31 = vld [vmem:[#allocation8 + $0xd4] sm:$0xf]  ;;  %v2578_v36 = vld [vmem:[#allocation8 + $0xdc] sm:$0xf] }
  0xbb   :  { %v2408_v39 = vor.u32 %v2577_v31, %v2405_v33  ;;  %v2416_v45 = vor.u32 %v2578_v36, %v2413_v37 }
  0xbc   :  { %1486 = vmatpush.bf16.msra.mxu0 %v2292_v43  ;;  %1512 = vmatpush.bf16.msra.mxu2 %v2300_v48  ;;  %v2569_v43 = vld [vmem:[#allocation8 + $0x94] sm:$0xf]  ;;  %v2574_v48 = vld [vmem:[#allocation8 + $0xb4] sm:$0xf0]  ;;  %v960_v51 = vpop.f32.mrf.mxu0 }
  0xbe   :  { %1499 = vmatpush.bf16.msra.mxu1 %v2296_v47  ;;  %1525 = vmatpush.bf16.msra.mxu3 %v2304_v52  ;;  %v973_v44 = vpop.f32.mrf.mxu1  ;;  %v2379_v47 = vld [vmem:[#allocation8 + $0x98] sm:$0xf]  ;;  %v2372_v52 = vor.u32 %v2573_v42, %v2371_v41 }
  0xbf   :  { %1487 = vmatmul.bf16.vlgmr.msra.gmra.mxu0 %v3077_v58  ;;  %1513 = vmatmul.bf16.vlgmr.msra.gmra.mxu2 %v3077_v58 }
  0xc0   :  { %1531 = vmatpush.bf16.msrb.mxu0 %v2532_v53  ;;  %1557 = vmatpush.bf16.msrb.mxu2 %v2540_v55  ;;  %v3083_v53 = vadd.f32 %v973_v44, %v960_v51  ;;  %v2380_v55 = vor.u32 %v2574_v48, %v2379_v47 }
  0xc1   :  { %1500 = vmatmul.bf16.vlgmr.msra.gmra.mxu1 %v3077_v58  ;;  %1526 = vmatmul.bf16.vlgmr.msra.gmra.mxu3 %v3077_v58 }
  0xc2   :  { %1544 = vmatpush.bf16.msrb.mxu1 %v2536_v54  ;;  %1570 = vmatpush.bf16.msrb.mxu3 %v2544_v57  ;;  %v2376_v54 = vor.u32 %v2569_v43, %v2373_v46  ;;  %v2384_v57 = vor.u32 %v2570_v49, %v2381_v50  ;;  %v986_v62 = vpop.f32.mrf.mxu2 }
  0xc4   :  { %1532 = vmatpush.bf16.msrb.mxu0 %v2500_v0  ;;  %1558 = vmatpush.bf16.msrb.mxu2 %v2508_v2  ;;  %v999_v63 = vpop.f32.mrf.mxu3  ;;  %v2562_v0 = vld [vmem:[#allocation8 + $0x5c] sm:$0xf]  ;;  %v962_v18 = vpop.f32.mrf.mxu0 }
  0xc5   :  { %v3085_v2 = vadd.f32 %v999_v63, %v986_v62 }
  0xc6   :  { %1545 = vmatpush.bf16.msrb.mxu1 %v2504_v1  ;;  %1571 = vmatpush.bf16.msrb.mxu3 %v2512_v6  ;;  %v2349_v1 = vld [vmem:[#allocation8 + $0x78] sm:$0xf0]  ;;  %v2307_v6 = vld [vmem:[#allocation8 + $0x10] sm:$0xf]  ;;  %v975_v11 = vpop.f32.mrf.mxu1 }
  0xc7   :  { %v2352_v12 = vor.u32 %v2562_v0, %v2349_v1  ;;  %v2308_v19 = vor.u32 %v2557_v7, %v2307_v6 }
  0xc8   :  { %1533 = vmatpush.bf16.msrb.mxu0 %v2468_v14  ;;  %1559 = vmatpush.bf16.msrb.mxu2 %v2476_v16  ;;  %v2315_v14 = vld [vmem:[#allocation8 + $0x18] sm:$0xf]  ;;  %v2554_v16 = vld [vmem:[#allocation8 + $0x1c] sm:$0xf] }
  0xc9   :  { %v2320_v22 = vor.u32 %v2554_v16, %v2317_v17 }
  0xca   :  { %1546 = vmatpush.bf16.msrb.mxu1 %v2472_v15  ;;  %1572 = vmatpush.bf16.msrb.mxu3 %v2480_v20  ;;  %v2558_v15 = vld [vmem:[#allocation8 + $0x34] sm:$0xf0]  ;;  %v2312_v20 = vor.u32 %v2553_v10, %v2309_v13  ;;  %v988_v23 = vpop.f32.mrf.mxu2 }
  0xcb   :  { %v2316_v21 = vor.u32 %v2558_v15, %v2315_v14 }
  0xcc   :  { %1534 = vmatpush.bf16.msrb.mxu0 %v2436_v26  ;;  %1560 = vmatpush.bf16.msrb.mxu2 %v2444_v28  ;;  %v1001_v24 = vpop.f32.mrf.mxu3 }
  0xce   :  { %1547 = vmatpush.bf16.msrb.mxu1 %v2440_v27  ;;  %1573 = vmatpush.bf16.msrb.mxu3 %v2448_v32 }
  0xd0   :  { %1535 = vmatpush.bf16.msrb.mxu0 %v2404_v38  ;;  %1561 = vmatpush.bf16.msrb.mxu2 %v2412_v40 }
  0xd2   :  { %1548 = vmatpush.bf16.msrb.mxu1 %v2408_v39  ;;  %1574 = vmatpush.bf16.msrb.mxu3 %v2416_v45 }
  0xd4   :  { %1536 = vmatpush.bf16.msrb.mxu0 %v2372_v52  ;;  %1562 = vmatpush.bf16.msrb.mxu2 %v2380_v55  ;;  %v3095_v52 = vld [vmem:[#allocation11] sm:$0xff] }
  0xd5   :  { %v1586_v8 = vperm.slane %v3095_v52, 1  ;;  %v1587_v63 = vperm.slane %v3095_v52, 2  ;;  %v1588_v1 = vperm.slane %v3095_v52, 3 }
  0xd6   :  { %1549 = vmatpush.bf16.msrb.mxu1 %v2376_v54  ;;  %1575 = vmatpush.bf16.msrb.mxu3 %v2384_v57  ;;  %v1585_v54 = vperm.slane %v3095_v52, 0 }
  0xd8   :  { %1537 = vmatpush.bf16.msrb.mxu0 %v2340_v3  ;;  %1563 = vmatpush.bf16.msrb.mxu2 %v2348_v5 }
  0xda   :  { %1550 = vmatpush.bf16.msrb.mxu1 %v2344_v4  ;;  %1576 = vmatpush.bf16.msrb.mxu3 %v2352_v12 }
  0xdc   :  { %1538 = vmatpush.bf16.msrb.mxu0 %v2308_v19  ;;  %1564 = vmatpush.bf16.msrb.mxu2 %v2316_v21  ;;  %v1012_v25 = vpop.f32.mrf.mxu0 }
  0xde   :  { %1551 = vmatpush.bf16.msrb.mxu1 %v2312_v20  ;;  %1577 = vmatpush.bf16.msrb.mxu3 %v2320_v22  ;;  %v1025_v26 = vpop.f32.mrf.mxu1 }
  0xdf   :  { %1539 = vmatmul.bf16.vlgmr.msrb.gmra.mxu0 %v3077_v58  ;;  %1565 = vmatmul.bf16.vlgmr.msrb.gmra.mxu2 %v3077_v58  ;;  %v1026_v27 = vadd.f32 %v1025_v26, %v1012_v25 }
  0xe1   :  { %1552 = vmatmul.bf16.vlgmr.msrb.gmra.mxu1 %v3077_v58  ;;  %1578 = vmatmul.bf16.vlgmr.msrb.gmra.mxu3 %v3077_v58 }
  0xe2   :  { %v1038_v28 = vpop.f32.mrf.mxu2 }
  0xe4   :  { %v1051_v29 = vpop.f32.mrf.mxu3  ;;  %v1014_v31 = vpop.f32.mrf.mxu0 }
  0xe5   :  { %v1052_v30 = vadd.f32 %v1051_v29, %v1038_v28 }
  0xe6   :  { %v1027_v32 = vpop.f32.mrf.mxu1 }
  0xe7   :  { %v1589_v32 = vperm.slane %v3095_v52, 4 }
  0xea   :  { %v1040_v33 = vpop.f32.mrf.mxu2 }
  0xec   :  { %v1053_v34 = vpop.f32.mrf.mxu3 }
  0xed   :  { %v1590_v34 = vperm.slane %v3095_v52, 5 }
  0xfc   :  { %v1064_v35 = vpop.f32.mrf.mxu0 }
  0xfe   :  { %v1077_v36 = vpop.f32.mrf.mxu1 }
  0xff   :  { %v3091_v37 = vadd.f32 %v1077_v36, %v1064_v35  ;;  %v1591_v35 = vperm.slane %v3095_v52, 6  ;;  %v1592_v36 = vperm.slane %v3095_v52, 7 }
 0x102   :  { %v1090_v38 = vpop.f32.mrf.mxu2 }
 0x104   :  { %v1103_v39 = vpop.f32.mrf.mxu3  ;;  %v1066_v41 = vpop.f32.mrf.mxu0 }
 0x105   :  { %v3093_v40 = vadd.f32 %v1103_v39, %v1090_v38 }
 0x106   :  { %v1079_v58 = vpop.f32.mrf.mxu1 }
 0x10a   :  { %v1092_v42 = vpop.f32.mrf.mxu2 }
 0x10c   :  { %v1105_v43 = vpop.f32.mrf.mxu3 }
 0x11c   :  { %v1116_v44 = vpop.f32.mrf.mxu0 }
 0x11e   :  { %v1129_v45 = vpop.f32.mrf.mxu1 }
 0x122   :  { %v1142_v46 = vpop.f32.mrf.mxu2 }
 0x124   :  { %v1155_v47 = vpop.f32.mrf.mxu3  ;;  %v1118_v48 = vpop.f32.mrf.mxu0 }
 0x125   :  { %v1156_v31 = vadd.f32 %v1155_v47, %v1142_v46 }
 0x126   :  { %v1131_v49 = vpop.f32.mrf.mxu1 }
 0x12a   :  { %v1144_v50 = vpop.f32.mrf.mxu2 }
 0x12c   :  { %v1157_v51 = vpop.f32.mrf.mxu3 }
 0x13c   :  { %v1488_v55 = vpop.f32.mrf.mxu0 }
 0x13d   :  { %v1489_v56 = vadd.f32 %v1488_v55, %v3083_v53 }
 0x13e   :  { %v1501_v9 = vpop.f32.mrf.mxu1 }
 0x13f   :  { %v1502_v57 = vadd.f32 %v1501_v9, %v3085_v2  ;;  %v1601_v59 = vadd.f32 %v1585_v54, %v1489_v56 }
 0x141   :  { %v1602_v60 = vadd.f32 %v1586_v8, %v1502_v57  ;;  %v2545_v61 = vmul.f32 -1.442695, %v1601_v59 }
 0x142   :  { %v1514_v0 = vpop.f32.mrf.mxu2 }
 0x143   :  { %v2546_v62 = vmul.f32 -1.442695, %v1602_v60  ;;  %2753 = vpow2.f32 %v2545_v61  ;;  %v1515_v3 = vadd.f32 %v1514_v0, %v1026_v27 }
 0x144   :  { %v1527_v4 = vpop.f32.mrf.mxu3  ;;  %v1490_v5 = vpop.f32.mrf.mxu0 }
 0x145   :  { %2755 = vpow2.f32 %v2546_v62  ;;  %v1528_v6 = vadd.f32 %v1527_v4, %v1052_v30  ;;  %v1603_v53 = vadd.f32 %v1587_v63, %v1515_v3  ;;  %v1130_v30 = vadd.f32 %v1129_v45, %v1116_v44 }
 0x146   :  { %v1503_v7 = vpop.f32.mrf.mxu1 }
 0x147   :  { %v1604_v10 = vadd.f32 %v1588_v1, %v1528_v6  ;;  %v2547_v11 = vmul.f32 -1.442695, %v1603_v53 }
 0x149   :  { %v2754_v2 = vpop.eup %2753  ;;  %v2548_v12 = vmul.f32 -1.442695, %v1604_v10  ;;  %2757 = vpow2.f32 %v2547_v11 }
 0x14a   :  { %v1615_v14 = vadd.f32 1.0, %v2754_v2  ;;  %v1516_v16 = vpop.f32.mrf.mxu2 }
 0x14b   :  { %v2756_v13 = vpop.eup %2755  ;;  %2759 = vpow2.f32 %v2548_v12 }
 0x14c   :  { %v3103_v15 = vadd.f32 1.0, %v2756_v13  ;;  %2761 = vrcp.f32 %v1615_v14  ;;  %v1529_v17 = vpop.f32.mrf.mxu3  ;;  %v1628_v27 = vand.u32 2147483648, %v1615_v14  ;;  %v1626_v33 = vand.u32 2147483647, %v1615_v14  ;;  %v1725_v13 = vld [vmem:[#allocation7] sm:$0xff] }
 0x14d   :  { %vm1622_vm0 = vweird.f32 %v1615_v14 }
 0x14e   :  { %2763 = vrcp.f32 %v3103_v15  ;;  %v1643_v29 = vand.u32 2147483648, %v3103_v15  ;;  %v1629_v58 = vor.u32 1.1754944e-38, %v1628_v27  ;;  %vm1637_vm1 = vweird.f32 %v3103_v15 }
 0x14f   :  { %v2758_v18 = vpop.eup %2757  ;;  %v1641_v42 = vand.u32 2147483647, %v3103_v15  ;;  %vm3133_vm2 = vcmp.eq.f32.partialorder %v1626_v33, 8.507059e+37 }
 0x150   :  { %v3106_v20 = vadd.f32 1.0, %v2758_v18  ;;  %v1644_v48 = vor.u32 1.1754944e-38, %v1643_v29 }
 0x151   :  { %v2760_v19 = vpop.eup %2759  ;;  %vm1642_vm15 = vcmp.eq.f32.partialorder %v1641_v42, 8.507059e+37 }
 0x152   :  { %v3108_v21 = vpop.eup %2761  ;;  %v3110_v22 = vadd.f32 1.0, %v2760_v19  ;;  %2765 = vrcp.f32 %v3106_v20  ;;  %v1666_v49 = vand.u32 2147483648, %v3106_v20  ;;  %vm1660_vm8 = vweird.f32 %v3106_v20  ;;  %v1726_v19 = vld [vmem:[#allocation7 + $0x8] sm:$0xff] }
 0x153   :  { %v1618_v24 = vmul.f32 %v3108_v21, %v1615_v14  ;;  %vm1623_vm3 = vweird.f32 %v3108_v21 }
 0x154   :  { %v3112_v23 = vpop.eup %2763  ;;  %2767 = vrcp.f32 %v3110_v22  ;;  %v1681_v51 = vand.u32 2147483648, %v3110_v22  ;;  %vm3144_vm7 = vmor %vm1622_vm0, %vm1623_vm3  ;;  %v1679_v63 = vand.u32 2147483647, %v3110_v22  ;;  %v1667_v0 = vor.u32 1.1754944e-38, %v1666_v49 }
 0x155   :  { %v1633_v25 = vmul.f32 %v3112_v23, %v3103_v15  ;;  %v1619_v26 = vsub.f32 1.0, %v1618_v24  ;;  %vm1638_vm4 = vweird.f32 %v3112_v23  ;;  %vm1675_vm9 = vweird.f32 %v3110_v22 }
 0x156   :  { %vm3153_vm10 = vmor %vm1637_vm1, %vm1638_vm4  ;;  %v1682_v5 = vor.u32 1.1754944e-38, %v1681_v51  ;;  %vm1680_vm14 = vcmp.eq.f32.partialorder %v1679_v63, 8.507059e+37 }
 0x157   :  { %v1634_v28 = vsub.f32 1.0, %v1633_v25  ;;  %v1620_v41 = vmul.f32 %v3108_v21, %v1619_v26 }
 0x158   :  { %v2766_v38 = vpop.eup %2765 }
 0x159   :  { %v1656_v44 = vmul.f32 %v2766_v38, %v3106_v20  ;;  %v1635_v47 = vmul.f32 %v3112_v23, %v1634_v28  ;;  %v1621_v57 = vadd.f32 %v3108_v21, %v1620_v41  ;;  %vm1661_vm5 = vweird.f32 %v2766_v38 }
 0x15a   :  { %v2768_v43 = vpop.eup %2767  ;;  %vm1662_vm11 = vmor %vm1660_vm8, %vm1661_vm5 }
 0x15b   :  { %v1671_v50 = vmul.f32 %v2768_v43, %v3110_v22  ;;  %v1657_v8 = vsub.f32 1.0, %v1656_v44  ;;  %v1636_v61 = vadd.f32 %v3112_v23, %v1635_v47  ;;  %vm1676_vm6 = vweird.f32 %v2768_v43 }
 0x15c   :  { %v1540_v39 = vpop.f32.mrf.mxu0  ;;  %v1625_v6 = vsel %vm3144_vm7, %v3108_v21, %v1621_v57  ;;  %vm3161_vm12 = vmor %vm1675_vm9, %vm1676_vm6 }
 0x15d   :  { %v1541_v45 = vadd.f32 %v1540_v39, %v3091_v37  ;;  %v1664_v37 = vand.u32 2147483647, %v3106_v20  ;;  %v1672_v9 = vsub.f32 1.0, %v1671_v50  ;;  %v1658_v60 = vmul.f32 %v2766_v38, %v1657_v8 }
 0x15e   :  { %v1553_v46 = vpop.f32.mrf.mxu1  ;;  %v1640_v14 = vsel %vm3153_vm10, %v3112_v23, %v1636_v61  ;;  %v1630_v22 = vsel %vm3133_vm2, %v1629_v58, %v1625_v6 }
 0x15f   :  { %v1554_v55 = vadd.f32 %v1553_v46, %v3093_v40  ;;  %v1605_v56 = vadd.f32 %v1589_v32, %v1541_v45  ;;  %v1673_v62 = vmul.f32 %v2768_v43, %v1672_v9  ;;  %v1659_v1 = vadd.f32 %v2766_v38, %v1658_v60 }
 0x160   :  { %vm1665_vm13 = vcmp.eq.f32.partialorder %v1664_v37, 8.507059e+37  ;;  %v1645_v28 = vsel %vm1642_vm15, %v1644_v48, %v1640_v14 }
 0x161   :  { %v1606_v59 = vadd.f32 %v1590_v34, %v1554_v55  ;;  %2769 = vtanh.f32 %v1605_v56  ;;  %v1674_v7 = vadd.f32 %v2768_v43, %v1673_v62  ;;  %v1663_v12 = vsel %vm1662_vm11, %v2766_v38, %v1659_v1 }
 0x162   :  { %v1566_v4 = vpop.f32.mrf.mxu2  ;;  %v1668_v17 = vsel %vm1665_vm13, %v1667_v0, %v1663_v12 }
 0x163   :  { %2771 = vtanh.f32 %v1606_v59  ;;  %v1567_v53 = vadd.f32 %v1566_v4, %v1130_v30  ;;  %v1678_v18 = vsel %vm3161_vm12, %v2768_v43, %v1674_v7  ;;  %v1727_v23 = vmul.f32 %v1725_v13, %v1668_v17 }
 0x164   :  { %v1579_v10 = vpop.f32.mrf.mxu3  ;;  %v1542_v11 = vpop.f32.mrf.mxu0  ;;  %v1683_v24 = vsel %vm1680_vm14, %v1682_v5, %v1678_v18 }
 0x165   :  { %v1580_v15 = vadd.f32 %v1579_v10, %v1156_v31  ;;  %v1607_v20 = vadd.f32 %v1591_v35, %v1567_v53  ;;  %v1728_v30 = vmul.f32 %v1726_v19, %v1683_v24 }
 0x166   :  { %v1555_v16 = vpop.f32.mrf.mxu1 }
 0x167   :  { %v2770_v21 = vpop.eup %2769  ;;  %v1608_v25 = vadd.f32 %v1592_v36, %v1580_v15  ;;  %v2549_v29 = vmul.f32 -1.442695, %v1607_v20 }
 0x168   :  { %v1729_v27 = vmul.f32 %v2770_v21, %v1630_v22 }
 0x169   :  { %v2772_v26 = vpop.eup %2771  ;;  %v2550_v32 = vmul.f32 -1.442695, %v1608_v25  ;;  %2773 = vpow2.f32 %v2549_v29 }
 0x16a   :  { %v1730_v31 = vmul.f32 %v2772_v26, %v1645_v28  ;;  %v1731_v33 = vadd.f32 %v1729_v27, %v1727_v23  ;;  %v1568_v52 = vpop.f32.mrf.mxu2 }
 0x16b   :  { %2775 = vpow2.f32 %v2550_v32 }
 0x16c   :  { %v1732_v34 = vadd.f32 %v1730_v31, %v1728_v30  ;;  %1739 = vst [vmem:[#allocation14] sm:$0xff] %v1731_v33  ;;  %v1581_v35 = vpop.f32.mrf.mxu3 }
 0x16e   :  { %1740 = vst [vmem:[#allocation14 + $0x8] sm:$0xff] %v1732_v34 }
 0x16f   :  { %1762 = dma.vmem_to_hbm [thread:$0]  %s1758_s5, 256, %s1760_s8, [#allocation15]   ;;  %v2774_v36 = vpop.eup %2773 }
 0x170   :  { %v1693_v39 = vadd.f32 1.0, %v2774_v36 }
 0x171   :  { %v2776_v38 = vpop.eup %2775 }
 0x172   :  { %v1694_v41 = vadd.f32 1.0, %v2776_v38  ;;  %2777 = vrcp.f32 %v1693_v39  ;;  %v1706_v47 = vand.u32 2147483648, %v1693_v39  ;;  %v1704_v49 = vand.u32 2147483647, %v1693_v39 }
 0x173   :  { %vm1700_vm2 = vweird.f32 %v1693_v39 }
 0x174   :  { %2779 = vrcp.f32 %v1694_v41  ;;  %v1721_v50 = vand.u32 2147483648, %v1694_v41  ;;  %v1719_v54 = vand.u32 2147483647, %v1694_v41  ;;  %v1707_v8 = vor.u32 1.1754944e-38, %v1706_v47 }
 0x175   :  { %2781 = vtanh.f32 %v1731_v33  ;;  %vm1715_vm4 = vweird.f32 %v1694_v41  ;;  %vm1705_vm5 = vcmp.eq.f32.partialorder %v1704_v49, 8.507059e+37 }
 0x176   :  { %2783 = vtanh.f32 %v1732_v34  ;;  %v1722_v57 = vor.u32 1.1754944e-38, %v1721_v50  ;;  %vm1720_vm7 = vcmp.eq.f32.partialorder %v1719_v54, 8.507059e+37 }
 0x178   :  { %v2778_v58 = vpop.eup %2777 }
 0x179   :  { %v1696_v43 = vmul.f32 %v2778_v58, %v1693_v39  ;;  %vm1701_vm0 = vweird.f32 %v2778_v58 }
 0x17a   :  { %v2780_v42 = vpop.eup %2779  ;;  %vm1702_vm3 = vmor %vm1700_vm2, %vm1701_vm0 }
 0x17b   :  { %v1711_v44 = vmul.f32 %v2780_v42, %v1694_v41  ;;  %v1697_v45 = vsub.f32 1.0, %v1696_v43  ;;  %vm1716_vm1 = vweird.f32 %v2780_v42  ;;  %v2782_v37 = vpop.eup %2781 }
 0x17c   :  { %vm1717_vm6 = vmor %vm1715_vm4, %vm1716_vm1  ;;  %v2784_v59 = vpop.eup %2783 }
 0x17d   :  { %v1712_v46 = vsub.f32 1.0, %v1711_v44  ;;  %v1698_v48 = vmul.f32 %v2778_v58, %v1697_v45 }
 0x17f   :  { %v1713_v51 = vmul.f32 %v2780_v42, %v1712_v46  ;;  %v1699_v55 = vadd.f32 %v2778_v58, %v1698_v48 }
 0x181   :  { %v1714_v56 = vadd.f32 %v2780_v42, %v1713_v51  ;;  %v1703_v9 = vsel %vm1702_vm3, %v2778_v58, %v1699_v55 }
 0x182   :  { %v1708_v60 = vsel %vm1705_vm5, %v1707_v8, %v1703_v9 }
 0x183   :  { %v1718_v61 = vsel %vm1717_vm6, %v2780_v42, %v1714_v56  ;;  %v1735_v40 = vmul.f32 %v2782_v37, %v1708_v60 }
 0x184   :  { %v1723_v62 = vsel %vm1720_vm7, %v1722_v57, %v1718_v61 }
 0x185   :  { %v1736_v63 = vmul.f32 %v2784_v59, %v1723_v62  ;;  %1737 = vst [vmem:[#allocation13] sm:$0xff] %v1735_v40 }
 0x187   :  { %1738 = vst [vmem:[#allocation13 + $0x8] sm:$0xff] %v1736_v63 }
 0x188   :  { %1751 = dma.vmem_to_hbm [thread:$0]  %s1747_s9, 256, %s1749_s12, [#allocation4]  }
 0x189   :  { %2985 = dma.done.wait [#allocation4], 256  }
 0x18a   :  { %2986 = vsyncadd [#allocation4], 4294967040 }
 0x18b   :  { %2987 = dma.done.wait [#allocation15], 256  }
 0x18c   :  { %2988 = vsyncadd [#allocation15], 4294967040 }
 0x18d   :  { %1771 = vsyncpa [#allocation3], 1 }
 0x18e   :  { %1772 = vsyncpa [#allocation6], 1 }
 0x18f   :  { %1773 = vsyncpa [#allocation9], 1 }
 0x190   :  { %1774 = vsyncpa [#allocation12], 1 }
 0x191   :  { %1775 = vsyncpa [#allocation4], 1 }
 0x192   :  { %1776 = vsyncpa [#allocation15], 1 }

</bundles_post_ra>
